<compile_context>
chip_gen: v7x
topology: tpu7x:2x2x1
jax: 0.10.0
libtpu: 0.0.40
codegen_flags: <defaults>
</compile_context>

<pallas_src>
import functools

import jax
import jax.numpy as jnp
from jax import lax
from jax.experimental import pallas as pl
from jax.experimental.pallas import tpu as pltpu


# ----------------------------------------------------------------------------
# Helpers
# ----------------------------------------------------------------------------
def _round_up(x, m):
    return (x + m - 1) // m * m


def _bspec(block_shape, index_map, buffers=None):
    """BlockSpec, optionally requesting a non-default pipeline buffer count.

    Grid-invariant weight blocks are single-buffered (halves their VMEM
    footprint).  Falls back to a plain BlockSpec if this JAX build does not
    accept `pipeline_mode`."""
    if buffers is not None and hasattr(pl, "Buffered"):
        try:
            return pl.BlockSpec(block_shape, index_map,
                                pipeline_mode=pl.Buffered(buffers))
        except TypeError:
            pass
    return pl.BlockSpec(block_shape, index_map)


def _vmem_budget_bytes():
    """~96 MiB on v5e/v6e (128 MiB physical), ~48 MiB on v7x (64 MiB)."""
    cap = None
    try:
        cap = getattr(pltpu.get_tpu_info(), "vmem_capacity_bytes", None)
    except Exception:
        cap = None
    if not cap:
        cap = 64 * 1024 * 1024          # conservative (v7x-sized) fallback
    return int(min(cap * 3 // 4, 100 * 1024 * 1024))


def _pick_time_chunk(T, tb, I, H, G4, cbytes, fixed_bytes, budget,
                     target_rows=512):
    """Largest time chunk s.t. t_chunk*tb MXU rows and VMEM stay reasonable."""
    per_t = tb * (2 * I * cbytes + 2 * H * cbytes + 4 * G4 + 4 * H)
    avail = max(0, int(budget * 0.6) - fixed_bytes)
    t_cap = max(1, avail // max(1, per_t))
    t_des = max(1, target_rows // tb)
    return max(1, min(T, t_des, t_cap))


def _pick_head_tv(Vp, tn, H, P, cbytes, budget):
    """Largest vocab tile under the VMEM budget (lane-dense logits stores)."""
    fixed = tn * H * cbytes * 2 + H * P * cbytes + tn * P * cbytes + 2 * P * 4
    avail = max(0, int(budget * 0.6) - fixed)
    for tv in (2048, 1024, 512, 256, 128):
        if Vp % tv == 0:
            need = 2 * (P * tv * cbytes + tv * 4 + tn * tv * 4)
            if need <= avail or tv == 128:
                return tv
    return 128


# ----------------------------------------------------------------------------
# Pallas kernel: fused multi-layer LSTM.
# Grid = (batch tiles ["parallel", v7x dual-TC], time chunks ["arbitrary"]).
# h/c carried in VMEM scratch across the time-chunk axis.  Gate order
# (i, f, g, o) matches torch.nn.LSTM.
# ----------------------------------------------------------------------------
def _lstm_stack_kernel(x_ref, wih_ref, whh_ref, b_ref, h0_ref, c0_ref,
                       out_ref, hn_ref, cn_ref,
                       h_sc, c_sc, act_sc, xg_sc,
                       *, L, H, I, t_chunk, tb, t_valid, t_total, unroll, cdt):
    tc = pl.program_id(1)
    needs_mask = t_total > t_valid          # static: time axis was zero-padded

    @pl.when(tc == 0)
    def _():
        h_sc[...] = h0_ref[...]
        c_sc[...] = c0_ref[...]

    for l in range(L):                      # static layer loop (fused layers)
        if l == 0:
            inp = x_ref[...].reshape(t_chunk * tb, I)   # tb % 8 == 0 -> view
            w_in = wih_ref[l, :I, :]                    # ref-level slice
        else:
            inp = act_sc[...].astype(cdt)
            w_in = wih_ref[l, :H, :]

        # Hoisted input projection: one large MXU matmul per (layer, chunk).
        xg_sc[...] = (jnp.dot(inp, w_in, preferred_element_type=jnp.float32)
                      + b_ref[l])                        # (t_chunk*tb, G4)

        # Loop-invariant recurrent weight, loaded once per (layer, chunk).
        # TODO(synk): hold W_hh stationary on the MXU via matmul_push_rhs /
        # matmul_acc_lhs / matmul_pop instead of a per-step jnp.dot.
        w_rec = whh_ref[l]                               # (H, G4)
        last_layer = l == L - 1

        def step(t, carry, w_rec=w_rec, last_layer=last_layer):
            h, c = carry
            row = pl.multiple_of(t * tb, 8)
            gates = xg_sc[pl.ds(row, tb), :] + jnp.dot(
                h.astype(cdt), w_rec, preferred_element_type=jnp.float32)
            i_g = jax.nn.sigmoid(gates[:, 0 * H:1 * H])
            f_g = jax.nn.sigmoid(gates[:, 1 * H:2 * H])
            g_g = jnp.tanh(gates[:, 2 * H:3 * H])
            o_g = jax.nn.sigmoid(gates[:, 3 * H:4 * H])
            c_new = f_g * c + i_g * g_g
            h_new = o_g * jnp.tanh(c_new)
            if needs_mask:                   # padded time steps: keep state
                valid = (tc * t_chunk + t) < t_valid
                c_new = jnp.where(valid, c_new, c)
                h_new = jnp.where(valid, h_new, h)
            if last_layer:
                out_ref[t] = h_new.astype(out_ref.dtype)
            else:
                act_sc[pl.ds(row, tb), :] = h_new
            return (h_new, c_new)

        h_fin, c_fin = lax.fori_loop(0, t_chunk, step, (h_sc[l], c_sc[l]),
                                     unroll=unroll)
        h_sc[l] = h_fin
        c_sc[l] = c_fin

    @pl.when(tc == pl.num_programs(1) - 1)
    def _():
        hn_ref[...] = h_sc[...]
        cn_ref[...] = c_sc[...]


def lstm_stack(x_tm, wih, whh, b, h0, c0, *, t_chunk, tb, t_valid,
               vmem_limit, unroll, compute_dtype):
    Tp, Bp, I = x_tm.shape
    L, KW, G4 = wih.shape
    H = h0.shape[-1]
    nt = Tp // t_chunk
    nb = Bp // tb
    kernel = functools.partial(
        _lstm_stack_kernel, L=L, H=H, I=I, t_chunk=t_chunk, tb=tb,
        t_valid=t_valid, t_total=Tp, unroll=unroll, cdt=compute_dtype)
    return pl.pallas_call(
        kernel,
        out_shape=(jax.ShapeDtypeStruct((Tp, Bp, H), compute_dtype),
                   jax.ShapeDtypeStruct((L, Bp, H), jnp.float32),
                   jax.ShapeDtypeStruct((L, Bp, H), jnp.float32)),
        grid_spec=pltpu.PrefetchScalarGridSpec(
            num_scalar_prefetch=0,
            grid=(nb, nt),
            in_specs=[
                pl.BlockSpec((t_chunk, tb, I), lambda i, t: (t, i, 0)),
                _bspec((L, KW, G4), lambda i, t: (0, 0, 0), buffers=1),
                _bspec((L, H, G4), lambda i, t: (0, 0, 0), buffers=1),
                _bspec((L, 1, G4), lambda i, t: (0, 0, 0), buffers=1),
                pl.BlockSpec((L, tb, H), lambda i, t: (0, i, 0)),
                pl.BlockSpec((L, tb, H), lambda i, t: (0, i, 0)),
            ],
            out_specs=(
                pl.BlockSpec((t_chunk, tb, H), lambda i, t: (t, i, 0)),
                pl.BlockSpec((L, tb, H), lambda i, t: (0, i, 0)),
                pl.BlockSpec((L, tb, H), lambda i, t: (0, i, 0)),
            ),
            scratch_shapes=[
                pltpu.VMEM((L, tb, H), jnp.float32),           # h carry
                pltpu.VMEM((L, tb, H), jnp.float32),           # c carry
                pltpu.VMEM((t_chunk * tb, H), jnp.float32),    # inter-layer act
                pltpu.VMEM((t_chunk * tb, G4), jnp.float32),   # x @ W_ih slab
            ]),
        compiler_params=pltpu.CompilerParams(
            dimension_semantics=("parallel", "arbitrary"),
            vmem_limit_bytes=vmem_limit),
    )(x_tm, wih, whh, b, h0, c0)


# ----------------------------------------------------------------------------
# Pallas kernel: projection head (proj -> LN -> ReLU -> out linear).
# 2-D grid (row tiles ["parallel"] x vocab tiles ["arbitrary", innermost]).
# LN/ReLU computed once per row tile (j == 0) and cached in VMEM scratch.
# ----------------------------------------------------------------------------
def _head_kernel(h_ref, wproj_ref, gamma_ref, beta_ref, wout_ref, bout_ref,
                 out_ref, y_sc):
    j = pl.program_id(1)

    @pl.when(j == 0)
    def _():
        p = jnp.dot(h_ref[...], wproj_ref[...],
                    preferred_element_type=jnp.float32)              # (tn, P)
        mean = jnp.mean(p, axis=-1, keepdims=True)
        var = jnp.mean(jnp.square(p - mean), axis=-1, keepdims=True)
        y = (p - mean) * lax.rsqrt(var + 1e-5)                       # LN eps
        y = y * gamma_ref[...] + beta_ref[...]
        # TODO(synk): Dropout(0.5) implemented as identity (inference / eval).
        y_sc[...] = jnp.maximum(y, 0.0).astype(y_sc.dtype)           # ReLU

    out_ref[...] = (jnp.dot(y_sc[...], wout_ref[...],
                            preferred_element_type=jnp.float32)
                    + bout_ref[...])


def head(h_bt, w_proj, gamma, beta, w_out, b_out, *, tn, tv, vmem_limit,
         compute_dtype):
    Np, H = h_bt.shape
    P = w_proj.shape[-1]
    Vp = w_out.shape[-1]
    return pl.pallas_call(
        _head_kernel,
        out_shape=jax.ShapeDtypeStruct((Np, Vp), jnp.float32),
        grid_spec=pltpu.PrefetchScalarGridSpec(
            num_scalar_prefetch=0,
            grid=(Np // tn, Vp // tv),
            in_specs=[
                pl.BlockSpec((tn, H), lambda i, j: (i, 0)),
                _bspec((H, P), lambda i, j: (0, 0), buffers=1),
                _bspec((1, P), lambda i, j: (0, 0), buffers=1),
                _bspec((1, P), lambda i, j: (0, 0), buffers=1),
                pl.BlockSpec((P, tv), lambda i, j: (0, j)),
                pl.BlockSpec((1, tv), lambda i, j: (0, j)),
            ],
            out_specs=pl.BlockSpec((tn, tv), lambda i, j: (i, j)),
            scratch_shapes=[pltpu.VMEM((tn, P), compute_dtype)],
        ),
        compiler_params=pltpu.CompilerParams(
            dimension_semantics=("parallel", "arbitrary"),
            vmem_limit_bytes=vmem_limit),
    )(h_bt, w_proj, gamma, beta, w_out, b_out)


# ----------------------------------------------------------------------------
# Full forward (embedding gather + padding glue in plain JAX, hot path above)
# ----------------------------------------------------------------------------
def lstm_decoder_forward(params, tokens, img_embeddings, h_n=None, c_n=None,
                         compute_dtype=jnp.bfloat16):
    f32 = jnp.float32
    cdt = jnp.dtype(compute_dtype)
    cbytes = cdt.itemsize

    emb = params["embedding"][tokens].astype(f32)            # (B, T, E) gather
    B, T, E = emb.shape
    Dimg = img_embeddings.shape[-1]
    # torch: img_embeddings (B, 1, D).repeat(1, T, 1) -> (B, T, D)
    img = jnp.broadcast_to(img_embeddings.astype(f32), (B, T, Dimg))
    x = jnp.concatenate([emb, img], axis=-1)                 # (B, T, I)
    I = E + Dimg

    L = len(params["lstm"])
    H = params["lstm"][0]["w_hh"].shape[0]
    P = params["w_proj"].shape[-1]
    V = params["w_out"].shape[-1]

    # Hardware-aligned padded sizes (only the 4H gate slab is lane-padded).
    G4 = _round_up(4 * H, 128)
    KW = max(I, H)
    Bp = _round_up(B, 8)
    Vp = _round_up(V, 128)

    budget = _vmem_budget_bytes()

    # Batch tiling: split over the two v7x TensorCores when batch is large
    # enough (tb stays a multiple of 16 so bf16 blocks remain well tiled).
    nb = 2 if (Bp >= 32 and Bp % 32 == 0) else 1
    tb = Bp // nb

    # --- pad / stack LSTM weights (gate order i,f,g,o kept contiguous) ---
    wih_l, whh_l, b_l = [], [], []
    in_sz = I
    for l in range(L):
        p = params["lstm"][l]
        wih_l.append(jnp.pad(p["w_ih"], ((0, KW - in_sz), (0, G4 - 4 * H))))
        whh_l.append(jnp.pad(p["w_hh"], ((0, 0), (0, G4 - 4 * H))))
        b_l.append(jnp.pad(p["b"], ((0, 0), (0, G4 - 4 * H))))
        in_sz = H
    wih_s = jnp.stack(wih_l).astype(cdt)                     # (L, KW, G4)
    whh_s = jnp.stack(whh_l).astype(cdt)                     # (L, H, G4)
    b_s = jnp.stack(b_l).astype(f32)                         # (L, 1, G4)

    if h_n is None or c_n is None:
        h0 = jnp.zeros((L, Bp, H), f32)
        c0 = jnp.zeros((L, Bp, H), f32)
    else:
        h0 = jnp.pad(h_n.astype(f32), ((0, 0), (0, Bp - B), (0, 0)))
        c0 = jnp.pad(c_n.astype(f32), ((0, 0), (0, Bp - B), (0, 0)))

    fixed = (L * (KW + H) * G4 * cbytes      # single-buffered weights
             + L * G4 * 4                    # bias
             + 4 * L * tb * H * 4            # h0/c0 blocks (double-buffered)
             + 2 * L * tb * H * 4)           # h/c scratch
    t_chunk = _pick_time_chunk(T, tb, I, H, G4, cbytes, fixed, budget)
    Tp = _round_up(T, t_chunk)

    # Layer-0 input: pad batch, go time-major, pad time to the chunk multiple.
    x = jnp.pad(x, ((0, Bp - B), (0, 0), (0, 0)))
    x_tm = jnp.transpose(x, (1, 0, 2))
    if Tp > T:
        x_tm = jnp.pad(x_tm, ((0, Tp - T), (0, 0), (0, 0)))
    x_tm = x_tm.astype(cdt)

    out_tm, hn_p, cn_p = lstm_stack(
        x_tm, wih_s, whh_s, b_s, h0, c0,
        t_chunk=t_chunk, tb=tb, t_valid=T, vmem_limit=budget,
        unroll=min(t_chunk, 8), compute_dtype=cdt)           # (Tp, Bp, H)

    # --- head: rows fed batch-major so the logits need no transpose ---
    h_bt = jnp.transpose(out_tm[:T], (1, 0, 2)).reshape(Bp * T, H)
    N = Bp * T
    tn = 256 if N >= 256 else _round_up(N, 8)
    Np = _round_up(N, tn)
    if Np > N:
        h_bt = jnp.pad(h_bt, ((0, Np - N), (0, 0)))
    tv = _pick_head_tv(Vp, tn, H, P, cbytes, budget)

    w_proj_p = params["w_proj"].astype(cdt)                  # (H, P)
    w_out_p = jnp.pad(params["w_out"], ((0, 0), (0, Vp - V))).astype(cdt)
    b_out_p = jnp.pad(params["b_out"], ((0, 0), (0, Vp - V))).astype(f32)

    logits_p = head(h_bt, w_proj_p, params["gamma"].astype(f32),
                    params["beta"].astype(f32), w_out_p, b_out_p,
                    tn=tn, tv=tv, vmem_limit=budget, compute_dtype=cdt)
    logits = logits_p[:N].reshape(Bp, T, Vp)[:B, :, :V]      # reshape, no xpose
    hn = hn_p[:, :B, :]
    cn = cn_p[:, :B, :]
    return logits, (hn, cn)


# ----------------------------------------------------------------------------
# Pure-JAX reference (for correctness check)
# ----------------------------------------------------------------------------
def reference_forward(params, tokens, img_embeddings):
    emb = params["embedding"][tokens]
    B, T, _ = emb.shape
    img = jnp.broadcast_to(img_embeddings, (B, T, img_embeddings.shape[-1]))
    x = jnp.concatenate([emb, img], axis=-1).astype(jnp.float32)
    L = len(params["lstm"])
    H = params["lstm"][0]["w_hh"].shape[0]
    layer_in = jnp.transpose(x, (1, 0, 2))
    hs, cs = [], []
    for l in range(L):
        p = params["lstm"][l]

        def step(carry, x_t):
            h, c = carry
            gates = x_t @ p["w_ih"] + h @ p["w_hh"] + p["b"]
            i = jax.nn.sigmoid(gates[:, 0 * H:1 * H])
            f = jax.nn.sigmoid(gates[:, 1 * H:2 * H])
            g = jnp.tanh(gates[:, 2 * H:3 * H])
            o = jax.nn.sigmoid(gates[:, 3 * H:4 * H])
            c_new = f * c + i * g
            h_new = o * jnp.tanh(c_new)
            return (h_new, c_new), h_new

        (hl, cl), layer_in = lax.scan(
            step, (jnp.zeros((B, H)), jnp.zeros((B, H))), layer_in)
        hs.append(hl)
        cs.append(cl)
    out = jnp.transpose(layer_in, (1, 0, 2))
    p = out @ params["w_proj"]
    mean = jnp.mean(p, axis=-1, keepdims=True)
    var = jnp.mean(jnp.square(p - mean), axis=-1, keepdims=True)
    y = (p - mean) * lax.rsqrt(var + 1e-5) * params["gamma"] + params["beta"]
    y = jnp.maximum(y, 0.0)
    logits = y @ params["w_out"] + params["b_out"]
    return logits, (jnp.stack(hs), jnp.stack(cs))


# ----------------------------------------------------------------------------
# Deterministic parameter construction (shapes from the module's __init__)
# ----------------------------------------------------------------------------
def make_params(key, vocab_size, embd_size, img_dim, hidden_size, n_layers,
                projection_dims):
    lstm_input_size = embd_size + img_dim
    keys = jax.random.split(key, 4 + 4 * n_layers)
    k_iter = iter(keys)
    params = {
        "embedding": 0.1 * jax.random.normal(next(k_iter),
                                             (vocab_size, embd_size),
                                             jnp.float32),
        "lstm": [],
    }
    in_sz = lstm_input_size
    for _ in range(n_layers):
        s = 1.0 / jnp.sqrt(hidden_size)
        w_ih = s * jax.random.normal(next(k_iter), (in_sz, 4 * hidden_size),
                                     jnp.float32)
        w_hh = s * jax.random.normal(next(k_iter),
                                     (hidden_size, 4 * hidden_size),
                                     jnp.float32)
        b_ih = s * jax.random.normal(next(k_iter), (4 * hidden_size,),
                                     jnp.float32)
        b_hh = s * jax.random.normal(next(k_iter), (4 * hidden_size,),
                                     jnp.float32)
        params["lstm"].append({
            "w_ih": w_ih,
            "w_hh": w_hh,
            "b": (b_ih + b_hh).reshape(1, 4 * hidden_size),
        })
        in_sz = hidden_size
    params["w_proj"] = (1.0 / jnp.sqrt(hidden_size)) * jax.random.normal(
        next(k_iter), (hidden_size, projection_dims), jnp.float32)
    params["gamma"] = jnp.ones((1, projection_dims), jnp.float32)
    params["beta"] = jnp.zeros((1, projection_dims), jnp.float32)
    params["w_out"] = (1.0 / jnp.sqrt(projection_dims)) * jax.random.normal(
        next(k_iter), (projection_dims, vocab_size), jnp.float32)
    params["b_out"] = 0.01 * jax.random.normal(next(k_iter), (1, vocab_size),
                                               jnp.float32)
    return params


if __name__ == "__main__":
    # Small config consistent with the module's forward:
    #   embed_size=16, img_dim=16 -> lstm_input_size=32, hidden_size=32,
    #   n_layers=2, projection_dim=32, vocab_size=64, batch=2, seq=8
    B, T = 2, 8
    VOCAB, EMBD, IMG_D, HID, NLAYERS, PROJ = 64, 16, 16, 32, 2, 32

    root = jax.random.PRNGKey(0)
    k_param, k_tok, k_img = jax.random.split(root, 3)

    params = make_params(k_param, VOCAB, EMBD, IMG_D, HID, NLAYERS, PROJ)
    tokens = jax.random.randint(k_tok, (B, T), 0, VOCAB, dtype=jnp.int32)
    img_embeddings = jax.random.normal(k_img, (B, 1, IMG_D), jnp.float32)

    ref_logits, (ref_h, ref_c) = reference_forward(params, tokens,
                                                   img_embeddings)

    # 1) f32 compute path: tight check of the kernel math against the ref.
    fwd_f32 = jax.jit(functools.partial(lstm_decoder_forward, params,
                                        compute_dtype=jnp.float32))
    logits32, (h32, c32) = fwd_f32(tokens, img_embeddings)
    jax.block_until_ready((logits32, h32, c32))
    assert logits32.shape == (B, T, VOCAB)
    assert h32.shape == (NLAYERS, B, HID) and c32.shape == (NLAYERS, B, HID)
    assert jnp.allclose(logits32, ref_logits, atol=2e-4, rtol=2e-4)
    assert jnp.allclose(h32, ref_h, atol=1e-4, rtol=1e-4)
    assert jnp.allclose(c32, ref_c, atol=1e-4, rtol=1e-4)

    # 2) bf16-weight MXU path (the performance configuration): loose check
    #    (bf16 matmul inputs, f32 accumulation -> loosened tolerances).
    fwd_bf16 = jax.jit(functools.partial(lstm_decoder_forward, params,
                                         compute_dtype=jnp.bfloat16))
    logits, (h_n, c_n) = fwd_bf16(tokens, img_embeddings)
    jax.block_until_ready((logits, h_n, c_n))
    assert logits.shape == (B, T, VOCAB)
    assert h_n.shape == (NLAYERS, B, HID) and c_n.shape == (NLAYERS, B, HID)
    assert jnp.allclose(logits, ref_logits, atol=3e-1, rtol=3e-1)
    assert jnp.allclose(h_n, ref_h, atol=1.5e-1, rtol=1.5e-1)
    assert jnp.allclose(c_n, ref_c, atol=1.5e-1, rtol=1.5e-1)

    print("KERNEL_OK")
</pallas_src>

<mosaic_0001>
module attributes {stable_mosaic.version = 11 : i64} {
  func.func @_head_kernel(%arg0: i32, %arg1: i32, %arg2: memref<64x32xf32, #tpu.memory_space<vmem>>, %arg3: memref<32x32xf32, #tpu.memory_space<vmem>>, %arg4: memref<1x32xf32, #tpu.memory_space<vmem>>, %arg5: memref<1x32xf32, #tpu.memory_space<vmem>>, %arg6: memref<32x128xf32, #tpu.memory_space<vmem>>, %arg7: memref<1x128xf32, #tpu.memory_space<vmem>>, %arg8: memref<64x128xf32, #tpu.memory_space<vmem>>, %arg9: memref<64x32xf32, #tpu.memory_space<vmem>>) attributes {dimension_semantics = [#tpu.dimension_semantics<parallel>, #tpu.dimension_semantics<arbitrary>], iteration_bounds = array<i64: 1, 1>, scalar_prefetch = 0 : i64, scratch_operands = 1 : i64, tpu.core_type = #tpu.core_type<tc>, window_params = [{transform_indices = @transform_0, window_bounds = array<i64: 64, 32>}, {pipeline_mode = #tpu.pipeline_mode<synchronous>, transform_indices = @transform_1, window_bounds = array<i64: 32, 32>}, {pipeline_mode = #tpu.pipeline_mode<synchronous>, transform_indices = @transform_2, window_bounds = array<i64: 1, 32>}, {pipeline_mode = #tpu.pipeline_mode<synchronous>, transform_indices = @transform_3, window_bounds = array<i64: 1, 32>}, {transform_indices = @transform_4, window_bounds = array<i64: 32, 128>}, {transform_indices = @transform_5, window_bounds = array<i64: 1, 128>}, {transform_indices = @transform_6, window_bounds = array<i64: 64, 128>}]} {
    %c0_i32 = arith.constant 0 : i32
    %0 = arith.cmpi eq, %arg1, %c0_i32 : i32
    %1 = arith.extui %0 : i1 to i32
    %c0_i32_0 = arith.constant 0 : i32
    %2 = arith.cmpi ne, %1, %c0_i32_0 : i32
    scf.if %2 {
      %c0_8 = arith.constant 0 : index
      %c0_9 = arith.constant 0 : index
      %10 = vector.load %arg2[%c0_8, %c0_9] : memref<64x32xf32, #tpu.memory_space<vmem>>, vector<64x32xf32>
      %c0_10 = arith.constant 0 : index
      %c0_11 = arith.constant 0 : index
      %11 = vector.load %arg3[%c0_10, %c0_11] : memref<32x32xf32, #tpu.memory_space<vmem>>, vector<32x32xf32>
      %cst_12 = arith.constant dense<0.000000e+00> : vector<64x32xf32>
      %12 = tpu.matmul %10, %11, %cst_12 {dimension_numbers = #tpu.dot_dimension_numbers<[1], [0], [0], [1], [0, 0, 1, 1], [], []>} : vector<64x32xf32>, vector<32x32xf32>, vector<64x32xf32> -> vector<64x32xf32>
      %cst_13 = arith.constant dense<0.000000e+00> : vector<64xf32>
      %13 = vector.multi_reduction <add>, %12, %cst_13 [1] : vector<64x32xf32> to vector<64xf32>
      %14 = vector.shape_cast %13 : vector<64xf32> to vector<64x1xf32>
      %cst_14 = arith.constant 3.200000e+01 : f32
      %15 = vector.broadcast %cst_14 : f32 to vector<64x1xf32>
      %16 = arith.divf %14, %15 : vector<64x1xf32>
      %17 = vector.broadcast %16 : vector<64x1xf32> to vector<64x32xf32>
      %18 = arith.subf %12, %17 : vector<64x32xf32>
      %19 = arith.mulf %18, %18 : vector<64x32xf32>
      %cst_15 = arith.constant dense<0.000000e+00> : vector<64xf32>
      %20 = vector.multi_reduction <add>, %19, %cst_15 [1] : vector<64x32xf32> to vector<64xf32>
      %21 = vector.shape_cast %20 : vector<64xf32> to vector<64x1xf32>
      %cst_16 = arith.constant 3.200000e+01 : f32
      %22 = vector.broadcast %cst_16 : f32 to vector<64x1xf32>
      %23 = arith.divf %21, %22 : vector<64x1xf32>
      %24 = vector.broadcast %16 : vector<64x1xf32> to vector<64x32xf32>
      %25 = arith.subf %12, %24 : vector<64x32xf32>
      %cst_17 = arith.constant 9.99999974E-6 : f32
      %26 = vector.broadcast %cst_17 : f32 to vector<64x1xf32>
      %27 = arith.addf %23, %26 : vector<64x1xf32>
      %28 = math.rsqrt %27 : vector<64x1xf32>
      %29 = vector.broadcast %28 : vector<64x1xf32> to vector<64x32xf32>
      %30 = arith.mulf %25, %29 : vector<64x32xf32>
      %c0_18 = arith.constant 0 : index
      %c0_19 = arith.constant 0 : index
      %31 = vector.load %arg4[%c0_18, %c0_19] : memref<1x32xf32, #tpu.memory_space<vmem>>, vector<1x32xf32>
      %32 = vector.broadcast %31 : vector<1x32xf32> to vector<64x32xf32>
      %33 = arith.mulf %30, %32 : vector<64x32xf32>
      %c0_20 = arith.constant 0 : index
      %c0_21 = arith.constant 0 : index
      %34 = vector.load %arg5[%c0_20, %c0_21] : memref<1x32xf32, #tpu.memory_space<vmem>>, vector<1x32xf32>
      %35 = vector.broadcast %34 : vector<1x32xf32> to vector<64x32xf32>
      %36 = arith.addf %33, %35 : vector<64x32xf32>
      %cst_22 = arith.constant 0.000000e+00 : f32
      %37 = vector.broadcast %cst_22 : f32 to vector<64x32xf32>
      %38 = arith.maximumf %36, %37 : vector<64x32xf32>
      %c0_23 = arith.constant 0 : index
      %c0_24 = arith.constant 0 : index
      %39 = vector.load %arg9[%c0_23, %c0_24] : memref<64x32xf32, #tpu.memory_space<vmem>>, vector<64x32xf32>
      tpu.vector_store %arg9[%c0_23, %c0_24], %38 {strides = array<i32>} : memref<64x32xf32, #tpu.memory_space<vmem>>, vector<64x32xf32>,
    } else {
    }
    %c0 = arith.constant 0 : index
    %c0_1 = arith.constant 0 : index
    %3 = vector.load %arg9[%c0, %c0_1] : memref<64x32xf32, #tpu.memory_space<vmem>>, vector<64x32xf32>
    %c0_2 = arith.constant 0 : index
    %c0_3 = arith.constant 0 : index
    %4 = vector.load %arg6[%c0_2, %c0_3] : memref<32x128xf32, #tpu.memory_space<vmem>>, vector<32x128xf32>
    %cst = arith.constant dense<0.000000e+00> : vector<64x128xf32>
    %5 = tpu.matmul %3, %4, %cst {dimension_numbers = #tpu.dot_dimension_numbers<[1], [0], [0], [1], [0, 0, 1, 1], [], []>} : vector<64x32xf32>, vector<32x128xf32>, vector<64x128xf32> -> vector<64x128xf32>
    %c0_4 = arith.constant 0 : index
    %c0_5 = arith.constant 0 : index
    %6 = vector.load %arg7[%c0_4, %c0_5] : memref<1x128xf32, #tpu.memory_space<vmem>>, vector<1x128xf32>
    %7 = vector.broadcast %6 : vector<1x128xf32> to vector<64x128xf32>
    %8 = arith.addf %5, %7 : vector<64x128xf32>
    %c0_6 = arith.constant 0 : index
    %c0_7 = arith.constant 0 : index
    %9 = vector.load %arg8[%c0_6, %c0_7] : memref<64x128xf32, #tpu.memory_space<vmem>>, vector<64x128xf32>
    tpu.vector_store %arg8[%c0_6, %c0_7], %8 {strides = array<i32>} : memref<64x128xf32, #tpu.memory_space<vmem>>, vector<64x128xf32>,
    return
  }
  func.func @transform_0(%arg0: i32, %arg1: i32) -> (i32, i32) {
    %c0_i32 = arith.constant 0 : i32
    %c0_i32_0 = arith.constant 0 : i32
    return %arg0, %c0_i32 : i32, i32
  }
  func.func @transform_1(%arg0: i32, %arg1: i32) -> (i32, i32) {
    %c0_i32 = arith.constant 0 : i32
    %c0_i32_0 = arith.constant 0 : i32
    %c0_i32_1 = arith.constant 0 : i32
    return %c0_i32, %c0_i32_0 : i32, i32
  }
  func.func @transform_2(%arg0: i32, %arg1: i32) -> (i32, i32) {
    %c0_i32 = arith.constant 0 : i32
    %c0_i32_0 = arith.constant 0 : i32
    %c0_i32_1 = arith.constant 0 : i32
    return %c0_i32, %c0_i32_0 : i32, i32
  }
  func.func @transform_3(%arg0: i32, %arg1: i32) -> (i32, i32) {
    %c0_i32 = arith.constant 0 : i32
    %c0_i32_0 = arith.constant 0 : i32
    %c0_i32_1 = arith.constant 0 : i32
    return %c0_i32, %c0_i32_0 : i32, i32
  }
  func.func @transform_4(%arg0: i32, %arg1: i32) -> (i32, i32) {
    %c0_i32 = arith.constant 0 : i32
    %c0_i32_0 = arith.constant 0 : i32
    return %c0_i32, %arg1 : i32, i32
  }
  func.func @transform_5(%arg0: i32, %arg1: i32) -> (i32, i32) {
    %c0_i32 = arith.constant 0 : i32
    %c0_i32_0 = arith.constant 0 : i32
    return %c0_i32, %arg1 : i32, i32
  }
  func.func @transform_6(%arg0: i32, %arg1: i32) -> (i32, i32) {
    %c0_i32 = arith.constant 0 : i32
    return %arg0, %arg1 : i32, i32
  }
}

module attributes {stable_mosaic.version = 11 : i64} {
  func.func @_lstm_stack_kernel(%arg0: i32, %arg1: i32, %arg2: memref<8x8x32xf32, #tpu.memory_space<vmem>>, %arg3: memref<2x32x128xf32, #tpu.memory_space<vmem>>, %arg4: memref<2x32x128xf32, #tpu.memory_space<vmem>>, %arg5: memref<2x1x128xf32, #tpu.memory_space<vmem>>, %arg6: memref<2x8x32xf32, #tpu.memory_space<vmem>>, %arg7: memref<2x8x32xf32, #tpu.memory_space<vmem>>, %arg8: memref<8x8x32xf32, #tpu.memory_space<vmem>>, %arg9: memref<2x8x32xf32, #tpu.memory_space<vmem>>, %arg10: memref<2x8x32xf32, #tpu.memory_space<vmem>>, %arg11: memref<2x8x32xf32, #tpu.memory_space<vmem>>, %arg12: memref<2x8x32xf32, #tpu.memory_space<vmem>>, %arg13: memref<64x32xf32, #tpu.memory_space<vmem>>, %arg14: memref<64x128xf32, #tpu.memory_space<vmem>>) attributes {dimension_semantics = [#tpu.dimension_semantics<parallel>, #tpu.dimension_semantics<arbitrary>], iteration_bounds = array<i64: 1, 1>, scalar_prefetch = 0 : i64, scratch_operands = 4 : i64, tpu.core_type = #tpu.core_type<tc>, window_params = [{transform_indices = @transform_0, window_bounds = array<i64: 8, 8, 32>}, {pipeline_mode = #tpu.pipeline_mode<synchronous>, transform_indices = @transform_1, window_bounds = array<i64: 2, 32, 128>}, {pipeline_mode = #tpu.pipeline_mode<synchronous>, transform_indices = @transform_2, window_bounds = array<i64: 2, 32, 128>}, {pipeline_mode = #tpu.pipeline_mode<synchronous>, transform_indices = @transform_3, window_bounds = array<i64: 2, 1, 128>}, {transform_indices = @transform_4, window_bounds = array<i64: 2, 8, 32>}, {transform_indices = @transform_5, window_bounds = array<i64: 2, 8, 32>}, {transform_indices = @transform_6, window_bounds = array<i64: 8, 8, 32>}, {transform_indices = @transform_7, window_bounds = array<i64: 2, 8, 32>}, {transform_indices = @transform_8, window_bounds = array<i64: 2, 8, 32>}]} {
    %c0_i32 = arith.constant 0 : i32
    %0 = arith.cmpi eq, %arg1, %c0_i32 : i32
    %1 = arith.extui %0 : i1 to i32
    %c0_i32_0 = arith.constant 0 : i32
    %2 = arith.cmpi ne, %1, %c0_i32_0 : i32
    scf.if %2 {
      %c0_183 = arith.constant 0 : index
      %c0_184 = arith.constant 0 : index
      %c0_185 = arith.constant 0 : index
      %593 = vector.load %arg6[%c0_183, %c0_184, %c0_185] : memref<2x8x32xf32, #tpu.memory_space<vmem>>, vector<2x8x32xf32>
      %c0_186 = arith.constant 0 : index
      %c0_187 = arith.constant 0 : index
      %c0_188 = arith.constant 0 : index
      %594 = vector.load %arg11[%c0_186, %c0_187, %c0_188] : memref<2x8x32xf32, #tpu.memory_space<vmem>>, vector<2x8x32xf32>
      tpu.vector_store %arg11[%c0_186, %c0_187, %c0_188], %593 {strides = array<i32>} : memref<2x8x32xf32, #tpu.memory_space<vmem>>, vector<2x8x32xf32>,
      %c0_189 = arith.constant 0 : index
      %c0_190 = arith.constant 0 : index
      %c0_191 = arith.constant 0 : index
      %595 = vector.load %arg7[%c0_189, %c0_190, %c0_191] : memref<2x8x32xf32, #tpu.memory_space<vmem>>, vector<2x8x32xf32>
      %c0_192 = arith.constant 0 : index
      %c0_193 = arith.constant 0 : index
      %c0_194 = arith.constant 0 : index
      %596 = vector.load %arg12[%c0_192, %c0_193, %c0_194] : memref<2x8x32xf32, #tpu.memory_space<vmem>>, vector<2x8x32xf32>
      tpu.vector_store %arg12[%c0_192, %c0_193, %c0_194], %595 {strides = array<i32>} : memref<2x8x32xf32, #tpu.memory_space<vmem>>, vector<2x8x32xf32>,
    } else {
    }
    %c0 = arith.constant 0 : index
    %c0_1 = arith.constant 0 : index
    %c0_2 = arith.constant 0 : index
    %3 = vector.load %arg2[%c0, %c0_1, %c0_2] : memref<8x8x32xf32, #tpu.memory_space<vmem>>, vector<8x8x32xf32>
    %4 = vector.shape_cast %3 : vector<8x8x32xf32> to vector<64x32xf32>
    %c0_3 = arith.constant 0 : index
    %c0_4 = arith.constant 0 : index
    %c0_5 = arith.constant 0 : index
    %5 = vector.load %arg3[%c0_3, %c0_4, %c0_5] : memref<2x32x128xf32, #tpu.memory_space<vmem>>, vector<1x32x128xf32>
    %6 = vector.shape_cast %5 : vector<1x32x128xf32> to vector<32x128xf32>
    %cst = arith.constant dense<0.000000e+00> : vector<64x128xf32>
    %7 = tpu.matmul %4, %6, %cst {dimension_numbers = #tpu.dot_dimension_numbers<[1], [0], [0], [1], [0, 0, 1, 1], [], []>} : vector<64x32xf32>, vector<32x128xf32>, vector<64x128xf32> -> vector<64x128xf32>
    %c0_6 = arith.constant 0 : index
    %c0_7 = arith.constant 0 : index
    %c0_8 = arith.constant 0 : index
    %8 = vector.load %arg5[%c0_6, %c0_7, %c0_8] : memref<2x1x128xf32, #tpu.memory_space<vmem>>, vector<1x1x128xf32>
    %9 = vector.shape_cast %8 : vector<1x1x128xf32> to vector<1x128xf32>
    %10 = vector.broadcast %9 : vector<1x128xf32> to vector<64x128xf32>
    %11 = arith.addf %7, %10 : vector<64x128xf32>
    %c0_9 = arith.constant 0 : index
    %c0_10 = arith.constant 0 : index
    %12 = vector.load %arg14[%c0_9, %c0_10] : memref<64x128xf32, #tpu.memory_space<vmem>>, vector<64x128xf32>
    tpu.vector_store %arg14[%c0_9, %c0_10], %11 {strides = array<i32>} : memref<64x128xf32, #tpu.memory_space<vmem>>, vector<64x128xf32>,
    %c0_11 = arith.constant 0 : index
    %c0_12 = arith.constant 0 : index
    %c0_13 = arith.constant 0 : index
    %13 = vector.load %arg4[%c0_11, %c0_12, %c0_13] : memref<2x32x128xf32, #tpu.memory_space<vmem>>, vector<1x32x128xf32>
    %14 = vector.shape_cast %13 : vector<1x32x128xf32> to vector<32x128xf32>
    %c0_14 = arith.constant 0 : index
    %c0_15 = arith.constant 0 : index
    %c0_16 = arith.constant 0 : index
    %15 = vector.load %arg11[%c0_14, %c0_15, %c0_16] : memref<2x8x32xf32, #tpu.memory_space<vmem>>, vector<1x8x32xf32>
    %16 = vector.shape_cast %15 : vector<1x8x32xf32> to vector<8x32xf32>
    %c0_17 = arith.constant 0 : index
    %c0_18 = arith.constant 0 : index
    %c0_19 = arith.constant 0 : index
    %17 = vector.load %arg12[%c0_17, %c0_18, %c0_19] : memref<2x8x32xf32, #tpu.memory_space<vmem>>, vector<1x8x32xf32>
    %18 = vector.shape_cast %17 : vector<1x8x32xf32> to vector<8x32xf32>
    %c0_i32_20 = arith.constant 0 : i32
    %c8_i32 = arith.constant 8 : i32
    %19 = arith.muli %c0_i32_20, %c8_i32 : i32
    %20 = tpu.assume_multiple %19, 8 : i32
    %21 = arith.index_cast %20 : i32 to index
    %c0_21 = arith.constant 0 : index
    %22 = vector.load %arg14[%21, %c0_21] : memref<64x128xf32, #tpu.memory_space<vmem>>, vector<8x128xf32>
    %cst_22 = arith.constant dense<0.000000e+00> : vector<8x128xf32>
    %23 = tpu.matmul %16, %14, %cst_22 {dimension_numbers = #tpu.dot_dimension_numbers<[1], [0], [0], [1], [0, 0, 1, 1], [], []>} : vector<8x32xf32>, vector<32x128xf32>, vector<8x128xf32> -> vector<8x128xf32>
    %24 = arith.addf %22, %23 : vector<8x128xf32>
    %25 = vector.extract_strided_slice %24 {offsets = [0, 0], sizes = [8, 32], strides = [1, 1]} : vector<8x128xf32> to vector<8x32xf32>
    %26 = arith.negf %25 : vector<8x32xf32>
    %27 = math.exp %26 : vector<8x32xf32>
    %cst_23 = arith.constant 1.000000e+00 : f32
    %28 = vector.broadcast %cst_23 : f32 to vector<8x32xf32>
    %29 = arith.addf %28, %27 : vector<8x32xf32>
    %30 = arith.divf %28, %29 : vector<8x32xf32>
    %31 = vector.extract_strided_slice %24 {offsets = [0, 32], sizes = [8, 32], strides = [1, 1]} : vector<8x128xf32> to vector<8x32xf32>
    %32 = arith.negf %31 : vector<8x32xf32>
    %33 = math.exp %32 : vector<8x32xf32>
    %cst_24 = arith.constant 1.000000e+00 : f32
    %34 = vector.broadcast %cst_24 : f32 to vector<8x32xf32>
    %35 = arith.addf %34, %33 : vector<8x32xf32>
    %36 = arith.divf %34, %35 : vector<8x32xf32>
    %37 = vector.extract_strided_slice %24 {offsets = [0, 64], sizes = [8, 32], strides = [1, 1]} : vector<8x128xf32> to vector<8x32xf32>
    %38 = math.tanh %37 : vector<8x32xf32>
    %39 = vector.extract_strided_slice %24 {offsets = [0, 96], sizes = [8, 32], strides = [1, 1]} : vector<8x128xf32> to vector<8x32xf32>
    %40 = arith.negf %39 : vector<8x32xf32>
    %41 = math.exp %40 : vector<8x32xf32>
    %cst_25 = arith.constant 1.000000e+00 : f32
    %42 = vector.broadcast %cst_25 : f32 to vector<8x32xf32>
    %43 = arith.addf %42, %41 : vector<8x32xf32>
    %44 = arith.divf %42, %43 : vector<8x32xf32>
    %45 = arith.mulf %36, %18 : vector<8x32xf32>
    %46 = arith.mulf %30, %38 : vector<8x32xf32>
    %47 = arith.addf %45, %46 : vector<8x32xf32>
    %48 = math.tanh %47 : vector<8x32xf32>
    %49 = arith.mulf %44, %48 : vector<8x32xf32>
    %50 = arith.index_cast %20 : i32 to index
    %c0_26 = arith.constant 0 : index
    %51 = vector.load %arg13[%50, %c0_26] : memref<64x32xf32, #tpu.memory_space<vmem>>, vector<8x32xf32>
    tpu.vector_store %arg13[%50, %c0_26], %49 {strides = array<i32>} : memref<64x32xf32, #tpu.memory_space<vmem>>, vector<8x32xf32>,
    %c1_i32 = arith.constant 1 : i32
    %c8_i32_27 = arith.constant 8 : i32
    %52 = arith.muli %c1_i32, %c8_i32_27 : i32
    %53 = tpu.assume_multiple %52, 8 : i32
    %54 = arith.index_cast %53 : i32 to index
    %c0_28 = arith.constant 0 : index
    %55 = vector.load %arg14[%54, %c0_28] : memref<64x128xf32, #tpu.memory_space<vmem>>, vector<8x128xf32>
    %cst_29 = arith.constant dense<0.000000e+00> : vector<8x128xf32>
    %56 = tpu.matmul %49, %14, %cst_29 {dimension_numbers = #tpu.dot_dimension_numbers<[1], [0], [0], [1], [0, 0, 1, 1], [], []>} : vector<8x32xf32>, vector<32x128xf32>, vector<8x128xf32> -> vector<8x128xf32>
    %57 = arith.addf %55, %56 : vector<8x128xf32>
    %58 = vector.extract_strided_slice %57 {offsets = [0, 0], sizes = [8, 32], strides = [1, 1]} : vector<8x128xf32> to vector<8x32xf32>
    %59 = arith.negf %58 : vector<8x32xf32>
    %60 = math.exp %59 : vector<8x32xf32>
    %cst_30 = arith.constant 1.000000e+00 : f32
    %61 = vector.broadcast %cst_30 : f32 to vector<8x32xf32>
    %62 = arith.addf %61, %60 : vector<8x32xf32>
    %63 = arith.divf %61, %62 : vector<8x32xf32>
    %64 = vector.extract_strided_slice %57 {offsets = [0, 32], sizes = [8, 32], strides = [1, 1]} : vector<8x128xf32> to vector<8x32xf32>
    %65 = arith.negf %64 : vector<8x32xf32>
    %66 = math.exp %65 : vector<8x32xf32>
    %cst_31 = arith.constant 1.000000e+00 : f32
    %67 = vector.broadcast %cst_31 : f32 to vector<8x32xf32>
    %68 = arith.addf %67, %66 : vector<8x32xf32>
    %69 = arith.divf %67, %68 : vector<8x32xf32>
    %70 = vector.extract_strided_slice %57 {offsets = [0, 64], sizes = [8, 32], strides = [1, 1]} : vector<8x128xf32> to vector<8x32xf32>
    %71 = math.tanh %70 : vector<8x32xf32>
    %72 = vector.extract_strided_slice %57 {offsets = [0, 96], sizes = [8, 32], strides = [1, 1]} : vector<8x128xf32> to vector<8x32xf32>
    %73 = arith.negf %72 : vector<8x32xf32>
    %74 = math.exp %73 : vector<8x32xf32>
    %cst_32 = arith.constant 1.000000e+00 : f32
    %75 = vector.broadcast %cst_32 : f32 to vector<8x32xf32>
    %76 = arith.addf %75, %74 : vector<8x32xf32>
    %77 = arith.divf %75, %76 : vector<8x32xf32>
    %78 = arith.mulf %69, %47 : vector<8x32xf32>
    %79 = arith.mulf %63, %71 : vector<8x32xf32>
    %80 = arith.addf %78, %79 : vector<8x32xf32>
    %81 = math.tanh %80 : vector<8x32xf32>
    %82 = arith.mulf %77, %81 : vector<8x32xf32>
    %83 = arith.index_cast %53 : i32 to index
    %c0_33 = arith.constant 0 : index
    %84 = vector.load %arg13[%83, %c0_33] : memref<64x32xf32, #tpu.memory_space<vmem>>, vector<8x32xf32>
    tpu.vector_store %arg13[%83, %c0_33], %82 {strides = array<i32>} : memref<64x32xf32, #tpu.memory_space<vmem>>, vector<8x32xf32>,
    %c2_i32 = arith.constant 2 : i32
    %c8_i32_34 = arith.constant 8 : i32
    %85 = arith.muli %c2_i32, %c8_i32_34 : i32
    %86 = tpu.assume_multiple %85, 8 : i32
    %87 = arith.index_cast %86 : i32 to index
    %c0_35 = arith.constant 0 : index
    %88 = vector.load %arg14[%87, %c0_35] : memref<64x128xf32, #tpu.memory_space<vmem>>, vector<8x128xf32>
    %cst_36 = arith.constant dense<0.000000e+00> : vector<8x128xf32>
    %89 = tpu.matmul %82, %14, %cst_36 {dimension_numbers = #tpu.dot_dimension_numbers<[1], [0], [0], [1], [0, 0, 1, 1], [], []>} : vector<8x32xf32>, vector<32x128xf32>, vector<8x128xf32> -> vector<8x128xf32>
    %90 = arith.addf %88, %89 : vector<8x128xf32>
    %91 = vector.extract_strided_slice %90 {offsets = [0, 0], sizes = [8, 32], strides = [1, 1]} : vector<8x128xf32> to vector<8x32xf32>
    %92 = arith.negf %91 : vector<8x32xf32>
    %93 = math.exp %92 : vector<8x32xf32>
    %cst_37 = arith.constant 1.000000e+00 : f32
    %94 = vector.broadcast %cst_37 : f32 to vector<8x32xf32>
    %95 = arith.addf %94, %93 : vector<8x32xf32>
    %96 = arith.divf %94, %95 : vector<8x32xf32>
    %97 = vector.extract_strided_slice %90 {offsets = [0, 32], sizes = [8, 32], strides = [1, 1]} : vector<8x128xf32> to vector<8x32xf32>
    %98 = arith.negf %97 : vector<8x32xf32>
    %99 = math.exp %98 : vector<8x32xf32>
    %cst_38 = arith.constant 1.000000e+00 : f32
    %100 = vector.broadcast %cst_38 : f32 to vector<8x32xf32>
    %101 = arith.addf %100, %99 : vector<8x32xf32>
    %102 = arith.divf %100, %101 : vector<8x32xf32>
    %103 = vector.extract_strided_slice %90 {offsets = [0, 64], sizes = [8, 32], strides = [1, 1]} : vector<8x128xf32> to vector<8x32xf32>
    %104 = math.tanh %103 : vector<8x32xf32>
    %105 = vector.extract_strided_slice %90 {offsets = [0, 96], sizes = [8, 32], strides = [1, 1]} : vector<8x128xf32> to vector<8x32xf32>
    %106 = arith.negf %105 : vector<8x32xf32>
    %107 = math.exp %106 : vector<8x32xf32>
    %cst_39 = arith.constant 1.000000e+00 : f32
    %108 = vector.broadcast %cst_39 : f32 to vector<8x32xf32>
    %109 = arith.addf %108, %107 : vector<8x32xf32>
    %110 = arith.divf %108, %109 : vector<8x32xf32>
    %111 = arith.mulf %102, %80 : vector<8x32xf32>
    %112 = arith.mulf %96, %104 : vector<8x32xf32>
    %113 = arith.addf %111, %112 : vector<8x32xf32>
    %114 = math.tanh %113 : vector<8x32xf32>
    %115 = arith.mulf %110, %114 : vector<8x32xf32>
    %116 = arith.index_cast %86 : i32 to index
    %c0_40 = arith.constant 0 : index
    %117 = vector.load %arg13[%116, %c0_40] : memref<64x32xf32, #tpu.memory_space<vmem>>, vector<8x32xf32>
    tpu.vector_store %arg13[%116, %c0_40], %115 {strides = array<i32>} : memref<64x32xf32, #tpu.memory_space<vmem>>, vector<8x32xf32>,
    %c3_i32 = arith.constant 3 : i32
    %c8_i32_41 = arith.constant 8 : i32
    %118 = arith.muli %c3_i32, %c8_i32_41 : i32
    %119 = tpu.assume_multiple %118, 8 : i32
    %120 = arith.index_cast %119 : i32 to index
    %c0_42 = arith.constant 0 : index
    %121 = vector.load %arg14[%120, %c0_42] : memref<64x128xf32, #tpu.memory_space<vmem>>, vector<8x128xf32>
    %cst_43 = arith.constant dense<0.000000e+00> : vector<8x128xf32>
    %122 = tpu.matmul %115, %14, %cst_43 {dimension_numbers = #tpu.dot_dimension_numbers<[1], [0], [0], [1], [0, 0, 1, 1], [], []>} : vector<8x32xf32>, vector<32x128xf32>, vector<8x128xf32> -> vector<8x128xf32>
    %123 = arith.addf %121, %122 : vector<8x128xf32>
    %124 = vector.extract_strided_slice %123 {offsets = [0, 0], sizes = [8, 32], strides = [1, 1]} : vector<8x128xf32> to vector<8x32xf32>
    %125 = arith.negf %124 : vector<8x32xf32>
    %126 = math.exp %125 : vector<8x32xf32>
    %cst_44 = arith.constant 1.000000e+00 : f32
    %127 = vector.broadcast %cst_44 : f32 to vector<8x32xf32>
    %128 = arith.addf %127, %126 : vector<8x32xf32>
    %129 = arith.divf %127, %128 : vector<8x32xf32>
    %130 = vector.extract_strided_slice %123 {offsets = [0, 32], sizes = [8, 32], strides = [1, 1]} : vector<8x128xf32> to vector<8x32xf32>
    %131 = arith.negf %130 : vector<8x32xf32>
    %132 = math.exp %131 : vector<8x32xf32>
    %cst_45 = arith.constant 1.000000e+00 : f32
    %133 = vector.broadcast %cst_45 : f32 to vector<8x32xf32>
    %134 = arith.addf %133, %132 : vector<8x32xf32>
    %135 = arith.divf %133, %134 : vector<8x32xf32>
    %136 = vector.extract_strided_slice %123 {offsets = [0, 64], sizes = [8, 32], strides = [1, 1]} : vector<8x128xf32> to vector<8x32xf32>
    %137 = math.tanh %136 : vector<8x32xf32>
    %138 = vector.extract_strided_slice %123 {offsets = [0, 96], sizes = [8, 32], strides = [1, 1]} : vector<8x128xf32> to vector<8x32xf32>
    %139 = arith.negf %138 : vector<8x32xf32>
    %140 = math.exp %139 : vector<8x32xf32>
    %cst_46 = arith.constant 1.000000e+00 : f32
    %141 = vector.broadcast %cst_46 : f32 to vector<8x32xf32>
    %142 = arith.addf %141, %140 : vector<8x32xf32>
    %143 = arith.divf %141, %142 : vector<8x32xf32>
    %144 = arith.mulf %135, %113 : vector<8x32xf32>
    %145 = arith.mulf %129, %137 : vector<8x32xf32>
    %146 = arith.addf %144, %145 : vector<8x32xf32>
    %147 = math.tanh %146 : vector<8x32xf32>
    %148 = arith.mulf %143, %147 : vector<8x32xf32>
    %149 = arith.index_cast %119 : i32 to index
    %c0_47 = arith.constant 0 : index
    %150 = vector.load %arg13[%149, %c0_47] : memref<64x32xf32, #tpu.memory_space<vmem>>, vector<8x32xf32>
    tpu.vector_store %arg13[%149, %c0_47], %148 {strides = array<i32>} : memref<64x32xf32, #tpu.memory_space<vmem>>, vector<8x32xf32>,
    %c4_i32 = arith.constant 4 : i32
    %c8_i32_48 = arith.constant 8 : i32
    %151 = arith.muli %c4_i32, %c8_i32_48 : i32
    %152 = tpu.assume_multiple %151, 8 : i32
    %153 = arith.index_cast %152 : i32 to index
    %c0_49 = arith.constant 0 : index
    %154 = vector.load %arg14[%153, %c0_49] : memref<64x128xf32, #tpu.memory_space<vmem>>, vector<8x128xf32>
    %cst_50 = arith.constant dense<0.000000e+00> : vector<8x128xf32>
    %155 = tpu.matmul %148, %14, %cst_50 {dimension_numbers = #tpu.dot_dimension_numbers<[1], [0], [0], [1], [0, 0, 1, 1], [], []>} : vector<8x32xf32>, vector<32x128xf32>, vector<8x128xf32> -> vector<8x128xf32>
    %156 = arith.addf %154, %155 : vector<8x128xf32>
    %157 = vector.extract_strided_slice %156 {offsets = [0, 0], sizes = [8, 32], strides = [1, 1]} : vector<8x128xf32> to vector<8x32xf32>
    %158 = arith.negf %157 : vector<8x32xf32>
    %159 = math.exp %158 : vector<8x32xf32>
    %cst_51 = arith.constant 1.000000e+00 : f32
    %160 = vector.broadcast %cst_51 : f32 to vector<8x32xf32>
    %161 = arith.addf %160, %159 : vector<8x32xf32>
    %162 = arith.divf %160, %161 : vector<8x32xf32>
    %163 = vector.extract_strided_slice %156 {offsets = [0, 32], sizes = [8, 32], strides = [1, 1]} : vector<8x128xf32> to vector<8x32xf32>
    %164 = arith.negf %163 : vector<8x32xf32>
    %165 = math.exp %164 : vector<8x32xf32>
    %cst_52 = arith.constant 1.000000e+00 : f32
    %166 = vector.broadcast %cst_52 : f32 to vector<8x32xf32>
    %167 = arith.addf %166, %165 : vector<8x32xf32>
    %168 = arith.divf %166, %167 : vector<8x32xf32>
    %169 = vector.extract_strided_slice %156 {offsets = [0, 64], sizes = [8, 32], strides = [1, 1]} : vector<8x128xf32> to vector<8x32xf32>
    %170 = math.tanh %169 : vector<8x32xf32>
    %171 = vector.extract_strided_slice %156 {offsets = [0, 96], sizes = [8, 32], strides = [1, 1]} : vector<8x128xf32> to vector<8x32xf32>
    %172 = arith.negf %171 : vector<8x32xf32>
    %173 = math.exp %172 : vector<8x32xf32>
    %cst_53 = arith.constant 1.000000e+00 : f32
    %174 = vector.broadcast %cst_53 : f32 to vector<8x32xf32>
    %175 = arith.addf %174, %173 : vector<8x32xf32>
    %176 = arith.divf %174, %175 : vector<8x32xf32>
    %177 = arith.mulf %168, %146 : vector<8x32xf32>
    %178 = arith.mulf %162, %170 : vector<8x32xf32>
    %179 = arith.addf %177, %178 : vector<8x32xf32>
    %180 = math.tanh %179 : vector<8x32xf32>
    %181 = arith.mulf %176, %180 : vector<8x32xf32>
    %182 = arith.index_cast %152 : i32 to index
    %c0_54 = arith.constant 0 : index
    %183 = vector.load %arg13[%182, %c0_54] : memref<64x32xf32, #tpu.memory_space<vmem>>, vector<8x32xf32>
    tpu.vector_store %arg13[%182, %c0_54], %181 {strides = array<i32>} : memref<64x32xf32, #tpu.memory_space<vmem>>, vector<8x32xf32>,
    %c5_i32 = arith.constant 5 : i32
    %c8_i32_55 = arith.constant 8 : i32
    %184 = arith.muli %c5_i32, %c8_i32_55 : i32
    %185 = tpu.assume_multiple %184, 8 : i32
    %186 = arith.index_cast %185 : i32 to index
    %c0_56 = arith.constant 0 : index
    %187 = vector.load %arg14[%186, %c0_56] : memref<64x128xf32, #tpu.memory_space<vmem>>, vector<8x128xf32>
    %cst_57 = arith.constant dense<0.000000e+00> : vector<8x128xf32>
    %188 = tpu.matmul %181, %14, %cst_57 {dimension_numbers = #tpu.dot_dimension_numbers<[1], [0], [0], [1], [0, 0, 1, 1], [], []>} : vector<8x32xf32>, vector<32x128xf32>, vector<8x128xf32> -> vector<8x128xf32>
    %189 = arith.addf %187, %188 : vector<8x128xf32>
    %190 = vector.extract_strided_slice %189 {offsets = [0, 0], sizes = [8, 32], strides = [1, 1]} : vector<8x128xf32> to vector<8x32xf32>
    %191 = arith.negf %190 : vector<8x32xf32>
    %192 = math.exp %191 : vector<8x32xf32>
    %cst_58 = arith.constant 1.000000e+00 : f32
    %193 = vector.broadcast %cst_58 : f32 to vector<8x32xf32>
    %194 = arith.addf %193, %192 : vector<8x32xf32>
    %195 = arith.divf %193, %194 : vector<8x32xf32>
    %196 = vector.extract_strided_slice %189 {offsets = [0, 32], sizes = [8, 32], strides = [1, 1]} : vector<8x128xf32> to vector<8x32xf32>
    %197 = arith.negf %196 : vector<8x32xf32>
    %198 = math.exp %197 : vector<8x32xf32>
    %cst_59 = arith.constant 1.000000e+00 : f32
    %199 = vector.broadcast %cst_59 : f32 to vector<8x32xf32>
    %200 = arith.addf %199, %198 : vector<8x32xf32>
    %201 = arith.divf %199, %200 : vector<8x32xf32>
    %202 = vector.extract_strided_slice %189 {offsets = [0, 64], sizes = [8, 32], strides = [1, 1]} : vector<8x128xf32> to vector<8x32xf32>
    %203 = math.tanh %202 : vector<8x32xf32>
    %204 = vector.extract_strided_slice %189 {offsets = [0, 96], sizes = [8, 32], strides = [1, 1]} : vector<8x128xf32> to vector<8x32xf32>
    %205 = arith.negf %204 : vector<8x32xf32>
    %206 = math.exp %205 : vector<8x32xf32>
    %cst_60 = arith.constant 1.000000e+00 : f32
    %207 = vector.broadcast %cst_60 : f32 to vector<8x32xf32>
    %208 = arith.addf %207, %206 : vector<8x32xf32>
    %209 = arith.divf %207, %208 : vector<8x32xf32>
    %210 = arith.mulf %201, %179 : vector<8x32xf32>
    %211 = arith.mulf %195, %203 : vector<8x32xf32>
    %212 = arith.addf %210, %211 : vector<8x32xf32>
    %213 = math.tanh %212 : vector<8x32xf32>
    %214 = arith.mulf %209, %213 : vector<8x32xf32>
    %215 = arith.index_cast %185 : i32 to index
    %c0_61 = arith.constant 0 : index
    %216 = vector.load %arg13[%215, %c0_61] : memref<64x32xf32, #tpu.memory_space<vmem>>, vector<8x32xf32>
    tpu.vector_store %arg13[%215, %c0_61], %214 {strides = array<i32>} : memref<64x32xf32, #tpu.memory_space<vmem>>, vector<8x32xf32>,
    %c6_i32 = arith.constant 6 : i32
    %c8_i32_62 = arith.constant 8 : i32
    %217 = arith.muli %c6_i32, %c8_i32_62 : i32
    %218 = tpu.assume_multiple %217, 8 : i32
    %219 = arith.index_cast %218 : i32 to index
    %c0_63 = arith.constant 0 : index
    %220 = vector.load %arg14[%219, %c0_63] : memref<64x128xf32, #tpu.memory_space<vmem>>, vector<8x128xf32>
    %cst_64 = arith.constant dense<0.000000e+00> : vector<8x128xf32>
    %221 = tpu.matmul %214, %14, %cst_64 {dimension_numbers = #tpu.dot_dimension_numbers<[1], [0], [0], [1], [0, 0, 1, 1], [], []>} : vector<8x32xf32>, vector<32x128xf32>, vector<8x128xf32> -> vector<8x128xf32>
    %222 = arith.addf %220, %221 : vector<8x128xf32>
    %223 = vector.extract_strided_slice %222 {offsets = [0, 0], sizes = [8, 32], strides = [1, 1]} : vector<8x128xf32> to vector<8x32xf32>
    %224 = arith.negf %223 : vector<8x32xf32>
    %225 = math.exp %224 : vector<8x32xf32>
    %cst_65 = arith.constant 1.000000e+00 : f32
    %226 = vector.broadcast %cst_65 : f32 to vector<8x32xf32>
    %227 = arith.addf %226, %225 : vector<8x32xf32>
    %228 = arith.divf %226, %227 : vector<8x32xf32>
    %229 = vector.extract_strided_slice %222 {offsets = [0, 32], sizes = [8, 32], strides = [1, 1]} : vector<8x128xf32> to vector<8x32xf32>
    %230 = arith.negf %229 : vector<8x32xf32>
    %231 = math.exp %230 : vector<8x32xf32>
    %cst_66 = arith.constant 1.000000e+00 : f32
    %232 = vector.broadcast %cst_66 : f32 to vector<8x32xf32>
    %233 = arith.addf %232, %231 : vector<8x32xf32>
    %234 = arith.divf %232, %233 : vector<8x32xf32>
    %235 = vector.extract_strided_slice %222 {offsets = [0, 64], sizes = [8, 32], strides = [1, 1]} : vector<8x128xf32> to vector<8x32xf32>
    %236 = math.tanh %235 : vector<8x32xf32>
    %237 = vector.extract_strided_slice %222 {offsets = [0, 96], sizes = [8, 32], strides = [1, 1]} : vector<8x128xf32> to vector<8x32xf32>
    %238 = arith.negf %237 : vector<8x32xf32>
    %239 = math.exp %238 : vector<8x32xf32>
    %cst_67 = arith.constant 1.000000e+00 : f32
    %240 = vector.broadcast %cst_67 : f32 to vector<8x32xf32>
    %241 = arith.addf %240, %239 : vector<8x32xf32>
    %242 = arith.divf %240, %241 : vector<8x32xf32>
    %243 = arith.mulf %234, %212 : vector<8x32xf32>
    %244 = arith.mulf %228, %236 : vector<8x32xf32>
    %245 = arith.addf %243, %244 : vector<8x32xf32>
    %246 = math.tanh %245 : vector<8x32xf32>
    %247 = arith.mulf %242, %246 : vector<8x32xf32>
    %248 = arith.index_cast %218 : i32 to index
    %c0_68 = arith.constant 0 : index
    %249 = vector.load %arg13[%248, %c0_68] : memref<64x32xf32, #tpu.memory_space<vmem>>, vector<8x32xf32>
    tpu.vector_store %arg13[%248, %c0_68], %247 {strides = array<i32>} : memref<64x32xf32, #tpu.memory_space<vmem>>, vector<8x32xf32>,
    %c7_i32 = arith.constant 7 : i32
    %c8_i32_69 = arith.constant 8 : i32
    %250 = arith.muli %c7_i32, %c8_i32_69 : i32
    %251 = tpu.assume_multiple %250, 8 : i32
    %252 = arith.index_cast %251 : i32 to index
    %c0_70 = arith.constant 0 : index
    %253 = vector.load %arg14[%252, %c0_70] : memref<64x128xf32, #tpu.memory_space<vmem>>, vector<8x128xf32>
    %cst_71 = arith.constant dense<0.000000e+00> : vector<8x128xf32>
    %254 = tpu.matmul %247, %14, %cst_71 {dimension_numbers = #tpu.dot_dimension_numbers<[1], [0], [0], [1], [0, 0, 1, 1], [], []>} : vector<8x32xf32>, vector<32x128xf32>, vector<8x128xf32> -> vector<8x128xf32>
    %255 = arith.addf %253, %254 : vector<8x128xf32>
    %256 = vector.extract_strided_slice %255 {offsets = [0, 0], sizes = [8, 32], strides = [1, 1]} : vector<8x128xf32> to vector<8x32xf32>
    %257 = arith.negf %256 : vector<8x32xf32>
    %258 = math.exp %257 : vector<8x32xf32>
    %cst_72 = arith.constant 1.000000e+00 : f32
    %259 = vector.broadcast %cst_72 : f32 to vector<8x32xf32>
    %260 = arith.addf %259, %258 : vector<8x32xf32>
    %261 = arith.divf %259, %260 : vector<8x32xf32>
    %262 = vector.extract_strided_slice %255 {offsets = [0, 32], sizes = [8, 32], strides = [1, 1]} : vector<8x128xf32> to vector<8x32xf32>
    %263 = arith.negf %262 : vector<8x32xf32>
    %264 = math.exp %263 : vector<8x32xf32>
    %cst_73 = arith.constant 1.000000e+00 : f32
    %265 = vector.broadcast %cst_73 : f32 to vector<8x32xf32>
    %266 = arith.addf %265, %264 : vector<8x32xf32>
    %267 = arith.divf %265, %266 : vector<8x32xf32>
    %268 = vector.extract_strided_slice %255 {offsets = [0, 64], sizes = [8, 32], strides = [1, 1]} : vector<8x128xf32> to vector<8x32xf32>
    %269 = math.tanh %268 : vector<8x32xf32>
    %270 = vector.extract_strided_slice %255 {offsets = [0, 96], sizes = [8, 32], strides = [1, 1]} : vector<8x128xf32> to vector<8x32xf32>
    %271 = arith.negf %270 : vector<8x32xf32>
    %272 = math.exp %271 : vector<8x32xf32>
    %cst_74 = arith.constant 1.000000e+00 : f32
    %273 = vector.broadcast %cst_74 : f32 to vector<8x32xf32>
    %274 = arith.addf %273, %272 : vector<8x32xf32>
    %275 = arith.divf %273, %274 : vector<8x32xf32>
    %276 = arith.mulf %267, %245 : vector<8x32xf32>
    %277 = arith.mulf %261, %269 : vector<8x32xf32>
    %278 = arith.addf %276, %277 : vector<8x32xf32>
    %279 = math.tanh %278 : vector<8x32xf32>
    %280 = arith.mulf %275, %279 : vector<8x32xf32>
    %281 = arith.index_cast %251 : i32 to index
    %c0_75 = arith.constant 0 : index
    %282 = vector.load %arg13[%281, %c0_75] : memref<64x32xf32, #tpu.memory_space<vmem>>, vector<8x32xf32>
    tpu.vector_store %arg13[%281, %c0_75], %280 {strides = array<i32>} : memref<64x32xf32, #tpu.memory_space<vmem>>, vector<8x32xf32>,
    %c8_i32_76 = arith.constant 8 : i32
    %c0_77 = arith.constant 0 : index
    %c0_78 = arith.constant 0 : index
    %c0_79 = arith.constant 0 : index
    %283 = vector.load %arg11[%c0_77, %c0_78, %c0_79] : memref<2x8x32xf32, #tpu.memory_space<vmem>>, vector<1x8x32xf32>
    %284 = vector.shape_cast %283 : vector<1x8x32xf32> to vector<8x32xf32>
    %285 = vector.shape_cast %280 : vector<8x32xf32> to vector<1x8x32xf32>
    tpu.vector_store %arg11[%c0_77, %c0_78, %c0_79], %285 {strides = array<i32>} : memref<2x8x32xf32, #tpu.memory_space<vmem>>, vector<1x8x32xf32>,
    %c0_80 = arith.constant 0 : index
    %c0_81 = arith.constant 0 : index
    %c0_82 = arith.constant 0 : index
    %286 = vector.load %arg12[%c0_80, %c0_81, %c0_82] : memref<2x8x32xf32, #tpu.memory_space<vmem>>, vector<1x8x32xf32>
    %287 = vector.shape_cast %286 : vector<1x8x32xf32> to vector<8x32xf32>
    %288 = vector.shape_cast %278 : vector<8x32xf32> to vector<1x8x32xf32>
    tpu.vector_store %arg12[%c0_80, %c0_81, %c0_82], %288 {strides = array<i32>} : memref<2x8x32xf32, #tpu.memory_space<vmem>>, vector<1x8x32xf32>,
    %c0_83 = arith.constant 0 : index
    %c0_84 = arith.constant 0 : index
    %289 = vector.load %arg13[%c0_83, %c0_84] : memref<64x32xf32, #tpu.memory_space<vmem>>, vector<64x32xf32>
    %c1 = arith.constant 1 : index
    %c0_85 = arith.constant 0 : index
    %c0_86 = arith.constant 0 : index
    %290 = vector.load %arg3[%c1, %c0_85, %c0_86] : memref<2x32x128xf32, #tpu.memory_space<vmem>>, vector<1x32x128xf32>
    %291 = vector.shape_cast %290 : vector<1x32x128xf32> to vector<32x128xf32>
    %cst_87 = arith.constant dense<0.000000e+00> : vector<64x128xf32>
    %292 = tpu.matmul %289, %291, %cst_87 {dimension_numbers = #tpu.dot_dimension_numbers<[1], [0], [0], [1], [0, 0, 1, 1], [], []>} : vector<64x32xf32>, vector<32x128xf32>, vector<64x128xf32> -> vector<64x128xf32>
    %c1_88 = arith.constant 1 : index
    %c0_89 = arith.constant 0 : index
    %c0_90 = arith.constant 0 : index
    %293 = vector.load %arg5[%c1_88, %c0_89, %c0_90] : memref<2x1x128xf32, #tpu.memory_space<vmem>>, vector<1x1x128xf32>
    %294 = vector.shape_cast %293 : vector<1x1x128xf32> to vector<1x128xf32>
    %295 = vector.broadcast %294 : vector<1x128xf32> to vector<64x128xf32>
    %296 = arith.addf %292, %295 : vector<64x128xf32>
    %c0_91 = arith.constant 0 : index
    %c0_92 = arith.constant 0 : index
    %297 = vector.load %arg14[%c0_91, %c0_92] : memref<64x128xf32, #tpu.memory_space<vmem>>, vector<64x128xf32>
    tpu.vector_store %arg14[%c0_91, %c0_92], %296 {strides = array<i32>} : memref<64x128xf32, #tpu.memory_space<vmem>>, vector<64x128xf32>,
    %c1_93 = arith.constant 1 : index
    %c0_94 = arith.constant 0 : index
    %c0_95 = arith.constant 0 : index
    %298 = vector.load %arg4[%c1_93, %c0_94, %c0_95] : memref<2x32x128xf32, #tpu.memory_space<vmem>>, vector<1x32x128xf32>
    %299 = vector.shape_cast %298 : vector<1x32x128xf32> to vector<32x128xf32>
    %c1_96 = arith.constant 1 : index
    %c0_97 = arith.constant 0 : index
    %c0_98 = arith.constant 0 : index
    %300 = vector.load %arg11[%c1_96, %c0_97, %c0_98] : memref<2x8x32xf32, #tpu.memory_space<vmem>>, vector<1x8x32xf32>
    %301 = vector.shape_cast %300 : vector<1x8x32xf32> to vector<8x32xf32>
    %c1_99 = arith.constant 1 : index
    %c0_100 = arith.constant 0 : index
    %c0_101 = arith.constant 0 : index
    %302 = vector.load %arg12[%c1_99, %c0_100, %c0_101] : memref<2x8x32xf32, #tpu.memory_space<vmem>>, vector<1x8x32xf32>
    %303 = vector.shape_cast %302 : vector<1x8x32xf32> to vector<8x32xf32>
    %c0_i32_102 = arith.constant 0 : i32
    %c8_i32_103 = arith.constant 8 : i32
    %304 = arith.muli %c0_i32_102, %c8_i32_103 : i32
    %305 = tpu.assume_multiple %304, 8 : i32
    %306 = arith.index_cast %305 : i32 to index
    %c0_104 = arith.constant 0 : index
    %307 = vector.load %arg14[%306, %c0_104] : memref<64x128xf32, #tpu.memory_space<vmem>>, vector<8x128xf32>
    %cst_105 = arith.constant dense<0.000000e+00> : vector<8x128xf32>
    %308 = tpu.matmul %301, %299, %cst_105 {dimension_numbers = #tpu.dot_dimension_numbers<[1], [0], [0], [1], [0, 0, 1, 1], [], []>} : vector<8x32xf32>, vector<32x128xf32>, vector<8x128xf32> -> vector<8x128xf32>
    %309 = arith.addf %307, %308 : vector<8x128xf32>
    %310 = vector.extract_strided_slice %309 {offsets = [0, 0], sizes = [8, 32], strides = [1, 1]} : vector<8x128xf32> to vector<8x32xf32>
    %311 = arith.negf %310 : vector<8x32xf32>
    %312 = math.exp %311 : vector<8x32xf32>
    %cst_106 = arith.constant 1.000000e+00 : f32
    %313 = vector.broadcast %cst_106 : f32 to vector<8x32xf32>
    %314 = arith.addf %313, %312 : vector<8x32xf32>
    %315 = arith.divf %313, %314 : vector<8x32xf32>
    %316 = vector.extract_strided_slice %309 {offsets = [0, 32], sizes = [8, 32], strides = [1, 1]} : vector<8x128xf32> to vector<8x32xf32>
    %317 = arith.negf %316 : vector<8x32xf32>
    %318 = math.exp %317 : vector<8x32xf32>
    %cst_107 = arith.constant 1.000000e+00 : f32
    %319 = vector.broadcast %cst_107 : f32 to vector<8x32xf32>
    %320 = arith.addf %319, %318 : vector<8x32xf32>
    %321 = arith.divf %319, %320 : vector<8x32xf32>
    %322 = vector.extract_strided_slice %309 {offsets = [0, 64], sizes = [8, 32], strides = [1, 1]} : vector<8x128xf32> to vector<8x32xf32>
    %323 = math.tanh %322 : vector<8x32xf32>
    %324 = vector.extract_strided_slice %309 {offsets = [0, 96], sizes = [8, 32], strides = [1, 1]} : vector<8x128xf32> to vector<8x32xf32>
    %325 = arith.negf %324 : vector<8x32xf32>
    %326 = math.exp %325 : vector<8x32xf32>
    %cst_108 = arith.constant 1.000000e+00 : f32
    %327 = vector.broadcast %cst_108 : f32 to vector<8x32xf32>
    %328 = arith.addf %327, %326 : vector<8x32xf32>
    %329 = arith.divf %327, %328 : vector<8x32xf32>
    %330 = arith.mulf %321, %303 : vector<8x32xf32>
    %331 = arith.mulf %315, %323 : vector<8x32xf32>
    %332 = arith.addf %330, %331 : vector<8x32xf32>
    %333 = math.tanh %332 : vector<8x32xf32>
    %334 = arith.mulf %329, %333 : vector<8x32xf32>
    %335 = arith.index_cast %c0_i32_102 : i32 to index
    %c0_109 = arith.constant 0 : index
    %c0_110 = arith.constant 0 : index
    %336 = vector.load %arg8[%335, %c0_109, %c0_110] : memref<8x8x32xf32, #tpu.memory_space<vmem>>, vector<1x8x32xf32>
    %337 = vector.shape_cast %336 : vector<1x8x32xf32> to vector<8x32xf32>
    %338 = vector.shape_cast %334 : vector<8x32xf32> to vector<1x8x32xf32>
    tpu.vector_store %arg8[%335, %c0_109, %c0_110], %338 {strides = array<i32>} : memref<8x8x32xf32, #tpu.memory_space<vmem>>, vector<1x8x32xf32>,
    %c1_i32_111 = arith.constant 1 : i32
    %c8_i32_112 = arith.constant 8 : i32
    %339 = arith.muli %c1_i32_111, %c8_i32_112 : i32
    %340 = tpu.assume_multiple %339, 8 : i32
    %341 = arith.index_cast %340 : i32 to index
    %c0_113 = arith.constant 0 : index
    %342 = vector.load %arg14[%341, %c0_113] : memref<64x128xf32, #tpu.memory_space<vmem>>, vector<8x128xf32>
    %cst_114 = arith.constant dense<0.000000e+00> : vector<8x128xf32>
    %343 = tpu.matmul %334, %299, %cst_114 {dimension_numbers = #tpu.dot_dimension_numbers<[1], [0], [0], [1], [0, 0, 1, 1], [], []>} : vector<8x32xf32>, vector<32x128xf32>, vector<8x128xf32> -> vector<8x128xf32>
    %344 = arith.addf %342, %343 : vector<8x128xf32>
    %345 = vector.extract_strided_slice %344 {offsets = [0, 0], sizes = [8, 32], strides = [1, 1]} : vector<8x128xf32> to vector<8x32xf32>
    %346 = arith.negf %345 : vector<8x32xf32>
    %347 = math.exp %346 : vector<8x32xf32>
    %cst_115 = arith.constant 1.000000e+00 : f32
    %348 = vector.broadcast %cst_115 : f32 to vector<8x32xf32>
    %349 = arith.addf %348, %347 : vector<8x32xf32>
    %350 = arith.divf %348, %349 : vector<8x32xf32>
    %351 = vector.extract_strided_slice %344 {offsets = [0, 32], sizes = [8, 32], strides = [1, 1]} : vector<8x128xf32> to vector<8x32xf32>
    %352 = arith.negf %351 : vector<8x32xf32>
    %353 = math.exp %352 : vector<8x32xf32>
    %cst_116 = arith.constant 1.000000e+00 : f32
    %354 = vector.broadcast %cst_116 : f32 to vector<8x32xf32>
    %355 = arith.addf %354, %353 : vector<8x32xf32>
    %356 = arith.divf %354, %355 : vector<8x32xf32>
    %357 = vector.extract_strided_slice %344 {offsets = [0, 64], sizes = [8, 32], strides = [1, 1]} : vector<8x128xf32> to vector<8x32xf32>
    %358 = math.tanh %357 : vector<8x32xf32>
    %359 = vector.extract_strided_slice %344 {offsets = [0, 96], sizes = [8, 32], strides = [1, 1]} : vector<8x128xf32> to vector<8x32xf32>
    %360 = arith.negf %359 : vector<8x32xf32>
    %361 = math.exp %360 : vector<8x32xf32>
    %cst_117 = arith.constant 1.000000e+00 : f32
    %362 = vector.broadcast %cst_117 : f32 to vector<8x32xf32>
    %363 = arith.addf %362, %361 : vector<8x32xf32>
    %364 = arith.divf %362, %363 : vector<8x32xf32>
    %365 = arith.mulf %356, %332 : vector<8x32xf32>
    %366 = arith.mulf %350, %358 : vector<8x32xf32>
    %367 = arith.addf %365, %366 : vector<8x32xf32>
    %368 = math.tanh %367 : vector<8x32xf32>
    %369 = arith.mulf %364, %368 : vector<8x32xf32>
    %370 = arith.index_cast %c1_i32_111 : i32 to index
    %c0_118 = arith.constant 0 : index
    %c0_119 = arith.constant 0 : index
    %371 = vector.load %arg8[%370, %c0_118, %c0_119] : memref<8x8x32xf32, #tpu.memory_space<vmem>>, vector<1x8x32xf32>
    %372 = vector.shape_cast %371 : vector<1x8x32xf32> to vector<8x32xf32>
    %373 = vector.shape_cast %369 : vector<8x32xf32> to vector<1x8x32xf32>
    tpu.vector_store %arg8[%370, %c0_118, %c0_119], %373 {strides = array<i32>} : memref<8x8x32xf32, #tpu.memory_space<vmem>>, vector<1x8x32xf32>,
    %c2_i32_120 = arith.constant 2 : i32
    %c8_i32_121 = arith.constant 8 : i32
    %374 = arith.muli %c2_i32_120, %c8_i32_121 : i32
    %375 = tpu.assume_multiple %374, 8 : i32
    %376 = arith.index_cast %375 : i32 to index
    %c0_122 = arith.constant 0 : index
    %377 = vector.load %arg14[%376, %c0_122] : memref<64x128xf32, #tpu.memory_space<vmem>>, vector<8x128xf32>
    %cst_123 = arith.constant dense<0.000000e+00> : vector<8x128xf32>
    %378 = tpu.matmul %369, %299, %cst_123 {dimension_numbers = #tpu.dot_dimension_numbers<[1], [0], [0], [1], [0, 0, 1, 1], [], []>} : vector<8x32xf32>, vector<32x128xf32>, vector<8x128xf32> -> vector<8x128xf32>
    %379 = arith.addf %377, %378 : vector<8x128xf32>
    %380 = vector.extract_strided_slice %379 {offsets = [0, 0], sizes = [8, 32], strides = [1, 1]} : vector<8x128xf32> to vector<8x32xf32>
    %381 = arith.negf %380 : vector<8x32xf32>
    %382 = math.exp %381 : vector<8x32xf32>
    %cst_124 = arith.constant 1.000000e+00 : f32
    %383 = vector.broadcast %cst_124 : f32 to vector<8x32xf32>
    %384 = arith.addf %383, %382 : vector<8x32xf32>
    %385 = arith.divf %383, %384 : vector<8x32xf32>
    %386 = vector.extract_strided_slice %379 {offsets = [0, 32], sizes = [8, 32], strides = [1, 1]} : vector<8x128xf32> to vector<8x32xf32>
    %387 = arith.negf %386 : vector<8x32xf32>
    %388 = math.exp %387 : vector<8x32xf32>
    %cst_125 = arith.constant 1.000000e+00 : f32
    %389 = vector.broadcast %cst_125 : f32 to vector<8x32xf32>
    %390 = arith.addf %389, %388 : vector<8x32xf32>
    %391 = arith.divf %389, %390 : vector<8x32xf32>
    %392 = vector.extract_strided_slice %379 {offsets = [0, 64], sizes = [8, 32], strides = [1, 1]} : vector<8x128xf32> to vector<8x32xf32>
    %393 = math.tanh %392 : vector<8x32xf32>
    %394 = vector.extract_strided_slice %379 {offsets = [0, 96], sizes = [8, 32], strides = [1, 1]} : vector<8x128xf32> to vector<8x32xf32>
    %395 = arith.negf %394 : vector<8x32xf32>
    %396 = math.exp %395 : vector<8x32xf32>
    %cst_126 = arith.constant 1.000000e+00 : f32
    %397 = vector.broadcast %cst_126 : f32 to vector<8x32xf32>
    %398 = arith.addf %397, %396 : vector<8x32xf32>
    %399 = arith.divf %397, %398 : vector<8x32xf32>
    %400 = arith.mulf %391, %367 : vector<8x32xf32>
    %401 = arith.mulf %385, %393 : vector<8x32xf32>
    %402 = arith.addf %400, %401 : vector<8x32xf32>
    %403 = math.tanh %402 : vector<8x32xf32>
    %404 = arith.mulf %399, %403 : vector<8x32xf32>
    %405 = arith.index_cast %c2_i32_120 : i32 to index
    %c0_127 = arith.constant 0 : index
    %c0_128 = arith.constant 0 : index
    %406 = vector.load %arg8[%405, %c0_127, %c0_128] : memref<8x8x32xf32, #tpu.memory_space<vmem>>, vector<1x8x32xf32>
    %407 = vector.shape_cast %406 : vector<1x8x32xf32> to vector<8x32xf32>
    %408 = vector.shape_cast %404 : vector<8x32xf32> to vector<1x8x32xf32>
    tpu.vector_store %arg8[%405, %c0_127, %c0_128], %408 {strides = array<i32>} : memref<8x8x32xf32, #tpu.memory_space<vmem>>, vector<1x8x32xf32>,
    %c3_i32_129 = arith.constant 3 : i32
    %c8_i32_130 = arith.constant 8 : i32
    %409 = arith.muli %c3_i32_129, %c8_i32_130 : i32
    %410 = tpu.assume_multiple %409, 8 : i32
    %411 = arith.index_cast %410 : i32 to index
    %c0_131 = arith.constant 0 : index
    %412 = vector.load %arg14[%411, %c0_131] : memref<64x128xf32, #tpu.memory_space<vmem>>, vector<8x128xf32>
    %cst_132 = arith.constant dense<0.000000e+00> : vector<8x128xf32>
    %413 = tpu.matmul %404, %299, %cst_132 {dimension_numbers = #tpu.dot_dimension_numbers<[1], [0], [0], [1], [0, 0, 1, 1], [], []>} : vector<8x32xf32>, vector<32x128xf32>, vector<8x128xf32> -> vector<8x128xf32>
    %414 = arith.addf %412, %413 : vector<8x128xf32>
    %415 = vector.extract_strided_slice %414 {offsets = [0, 0], sizes = [8, 32], strides = [1, 1]} : vector<8x128xf32> to vector<8x32xf32>
    %416 = arith.negf %415 : vector<8x32xf32>
    %417 = math.exp %416 : vector<8x32xf32>
    %cst_133 = arith.constant 1.000000e+00 : f32
    %418 = vector.broadcast %cst_133 : f32 to vector<8x32xf32>
    %419 = arith.addf %418, %417 : vector<8x32xf32>
    %420 = arith.divf %418, %419 : vector<8x32xf32>
    %421 = vector.extract_strided_slice %414 {offsets = [0, 32], sizes = [8, 32], strides = [1, 1]} : vector<8x128xf32> to vector<8x32xf32>
    %422 = arith.negf %421 : vector<8x32xf32>
    %423 = math.exp %422 : vector<8x32xf32>
    %cst_134 = arith.constant 1.000000e+00 : f32
    %424 = vector.broadcast %cst_134 : f32 to vector<8x32xf32>
    %425 = arith.addf %424, %423 : vector<8x32xf32>
    %426 = arith.divf %424, %425 : vector<8x32xf32>
    %427 = vector.extract_strided_slice %414 {offsets = [0, 64], sizes = [8, 32], strides = [1, 1]} : vector<8x128xf32> to vector<8x32xf32>
    %428 = math.tanh %427 : vector<8x32xf32>
    %429 = vector.extract_strided_slice %414 {offsets = [0, 96], sizes = [8, 32], strides = [1, 1]} : vector<8x128xf32> to vector<8x32xf32>
    %430 = arith.negf %429 : vector<8x32xf32>
    %431 = math.exp %430 : vector<8x32xf32>
    %cst_135 = arith.constant 1.000000e+00 : f32
    %432 = vector.broadcast %cst_135 : f32 to vector<8x32xf32>
    %433 = arith.addf %432, %431 : vector<8x32xf32>
    %434 = arith.divf %432, %433 : vector<8x32xf32>
    %435 = arith.mulf %426, %402 : vector<8x32xf32>
    %436 = arith.mulf %420, %428 : vector<8x32xf32>
    %437 = arith.addf %435, %436 : vector<8x32xf32>
    %438 = math.tanh %437 : vector<8x32xf32>
    %439 = arith.mulf %434, %438 : vector<8x32xf32>
    %440 = arith.index_cast %c3_i32_129 : i32 to index
    %c0_136 = arith.constant 0 : index
    %c0_137 = arith.constant 0 : index
    %441 = vector.load %arg8[%440, %c0_136, %c0_137] : memref<8x8x32xf32, #tpu.memory_space<vmem>>, vector<1x8x32xf32>
    %442 = vector.shape_cast %441 : vector<1x8x32xf32> to vector<8x32xf32>
    %443 = vector.shape_cast %439 : vector<8x32xf32> to vector<1x8x32xf32>
    tpu.vector_store %arg8[%440, %c0_136, %c0_137], %443 {strides = array<i32>} : memref<8x8x32xf32, #tpu.memory_space<vmem>>, vector<1x8x32xf32>,
    %c4_i32_138 = arith.constant 4 : i32
    %c8_i32_139 = arith.constant 8 : i32
    %444 = arith.muli %c4_i32_138, %c8_i32_139 : i32
    %445 = tpu.assume_multiple %444, 8 : i32
    %446 = arith.index_cast %445 : i32 to index
    %c0_140 = arith.constant 0 : index
    %447 = vector.load %arg14[%446, %c0_140] : memref<64x128xf32, #tpu.memory_space<vmem>>, vector<8x128xf32>
    %cst_141 = arith.constant dense<0.000000e+00> : vector<8x128xf32>
    %448 = tpu.matmul %439, %299, %cst_141 {dimension_numbers = #tpu.dot_dimension_numbers<[1], [0], [0], [1], [0, 0, 1, 1], [], []>} : vector<8x32xf32>, vector<32x128xf32>, vector<8x128xf32> -> vector<8x128xf32>
    %449 = arith.addf %447, %448 : vector<8x128xf32>
    %450 = vector.extract_strided_slice %449 {offsets = [0, 0], sizes = [8, 32], strides = [1, 1]} : vector<8x128xf32> to vector<8x32xf32>
    %451 = arith.negf %450 : vector<8x32xf32>
    %452 = math.exp %451 : vector<8x32xf32>
    %cst_142 = arith.constant 1.000000e+00 : f32
    %453 = vector.broadcast %cst_142 : f32 to vector<8x32xf32>
    %454 = arith.addf %453, %452 : vector<8x32xf32>
    %455 = arith.divf %453, %454 : vector<8x32xf32>
    %456 = vector.extract_strided_slice %449 {offsets = [0, 32], sizes = [8, 32], strides = [1, 1]} : vector<8x128xf32> to vector<8x32xf32>
    %457 = arith.negf %456 : vector<8x32xf32>
    %458 = math.exp %457 : vector<8x32xf32>
    %cst_143 = arith.constant 1.000000e+00 : f32
    %459 = vector.broadcast %cst_143 : f32 to vector<8x32xf32>
    %460 = arith.addf %459, %458 : vector<8x32xf32>
    %461 = arith.divf %459, %460 : vector<8x32xf32>
    %462 = vector.extract_strided_slice %449 {offsets = [0, 64], sizes = [8, 32], strides = [1, 1]} : vector<8x128xf32> to vector<8x32xf32>
    %463 = math.tanh %462 : vector<8x32xf32>
    %464 = vector.extract_strided_slice %449 {offsets = [0, 96], sizes = [8, 32], strides = [1, 1]} : vector<8x128xf32> to vector<8x32xf32>
    %465 = arith.negf %464 : vector<8x32xf32>
    %466 = math.exp %465 : vector<8x32xf32>
    %cst_144 = arith.constant 1.000000e+00 : f32
    %467 = vector.broadcast %cst_144 : f32 to vector<8x32xf32>
    %468 = arith.addf %467, %466 : vector<8x32xf32>
    %469 = arith.divf %467, %468 : vector<8x32xf32>
    %470 = arith.mulf %461, %437 : vector<8x32xf32>
    %471 = arith.mulf %455, %463 : vector<8x32xf32>
    %472 = arith.addf %470, %471 : vector<8x32xf32>
    %473 = math.tanh %472 : vector<8x32xf32>
    %474 = arith.mulf %469, %473 : vector<8x32xf32>
    %475 = arith.index_cast %c4_i32_138 : i32 to index
    %c0_145 = arith.constant 0 : index
    %c0_146 = arith.constant 0 : index
    %476 = vector.load %arg8[%475, %c0_145, %c0_146] : memref<8x8x32xf32, #tpu.memory_space<vmem>>, vector<1x8x32xf32>
    %477 = vector.shape_cast %476 : vector<1x8x32xf32> to vector<8x32xf32>
    %478 = vector.shape_cast %474 : vector<8x32xf32> to vector<1x8x32xf32>
    tpu.vector_store %arg8[%475, %c0_145, %c0_146], %478 {strides = array<i32>} : memref<8x8x32xf32, #tpu.memory_space<vmem>>, vector<1x8x32xf32>,
    %c5_i32_147 = arith.constant 5 : i32
    %c8_i32_148 = arith.constant 8 : i32
    %479 = arith.muli %c5_i32_147, %c8_i32_148 : i32
    %480 = tpu.assume_multiple %479, 8 : i32
    %481 = arith.index_cast %480 : i32 to index
    %c0_149 = arith.constant 0 : index
    %482 = vector.load %arg14[%481, %c0_149] : memref<64x128xf32, #tpu.memory_space<vmem>>, vector<8x128xf32>
    %cst_150 = arith.constant dense<0.000000e+00> : vector<8x128xf32>
    %483 = tpu.matmul %474, %299, %cst_150 {dimension_numbers = #tpu.dot_dimension_numbers<[1], [0], [0], [1], [0, 0, 1, 1], [], []>} : vector<8x32xf32>, vector<32x128xf32>, vector<8x128xf32> -> vector<8x128xf32>
    %484 = arith.addf %482, %483 : vector<8x128xf32>
    %485 = vector.extract_strided_slice %484 {offsets = [0, 0], sizes = [8, 32], strides = [1, 1]} : vector<8x128xf32> to vector<8x32xf32>
    %486 = arith.negf %485 : vector<8x32xf32>
    %487 = math.exp %486 : vector<8x32xf32>
    %cst_151 = arith.constant 1.000000e+00 : f32
    %488 = vector.broadcast %cst_151 : f32 to vector<8x32xf32>
    %489 = arith.addf %488, %487 : vector<8x32xf32>
    %490 = arith.divf %488, %489 : vector<8x32xf32>
    %491 = vector.extract_strided_slice %484 {offsets = [0, 32], sizes = [8, 32], strides = [1, 1]} : vector<8x128xf32> to vector<8x32xf32>
    %492 = arith.negf %491 : vector<8x32xf32>
    %493 = math.exp %492 : vector<8x32xf32>
    %cst_152 = arith.constant 1.000000e+00 : f32
    %494 = vector.broadcast %cst_152 : f32 to vector<8x32xf32>
    %495 = arith.addf %494, %493 : vector<8x32xf32>
    %496 = arith.divf %494, %495 : vector<8x32xf32>
    %497 = vector.extract_strided_slice %484 {offsets = [0, 64], sizes = [8, 32], strides = [1, 1]} : vector<8x128xf32> to vector<8x32xf32>
    %498 = math.tanh %497 : vector<8x32xf32>
    %499 = vector.extract_strided_slice %484 {offsets = [0, 96], sizes = [8, 32], strides = [1, 1]} : vector<8x128xf32> to vector<8x32xf32>
    %500 = arith.negf %499 : vector<8x32xf32>
    %501 = math.exp %500 : vector<8x32xf32>
    %cst_153 = arith.constant 1.000000e+00 : f32
    %502 = vector.broadcast %cst_153 : f32 to vector<8x32xf32>
    %503 = arith.addf %502, %501 : vector<8x32xf32>
    %504 = arith.divf %502, %503 : vector<8x32xf32>
    %505 = arith.mulf %496, %472 : vector<8x32xf32>
    %506 = arith.mulf %490, %498 : vector<8x32xf32>
    %507 = arith.addf %505, %506 : vector<8x32xf32>
    %508 = math.tanh %507 : vector<8x32xf32>
    %509 = arith.mulf %504, %508 : vector<8x32xf32>
    %510 = arith.index_cast %c5_i32_147 : i32 to index
    %c0_154 = arith.constant 0 : index
    %c0_155 = arith.constant 0 : index
    %511 = vector.load %arg8[%510, %c0_154, %c0_155] : memref<8x8x32xf32, #tpu.memory_space<vmem>>, vector<1x8x32xf32>
    %512 = vector.shape_cast %511 : vector<1x8x32xf32> to vector<8x32xf32>
    %513 = vector.shape_cast %509 : vector<8x32xf32> to vector<1x8x32xf32>
    tpu.vector_store %arg8[%510, %c0_154, %c0_155], %513 {strides = array<i32>} : memref<8x8x32xf32, #tpu.memory_space<vmem>>, vector<1x8x32xf32>,
    %c6_i32_156 = arith.constant 6 : i32
    %c8_i32_157 = arith.constant 8 : i32
    %514 = arith.muli %c6_i32_156, %c8_i32_157 : i32
    %515 = tpu.assume_multiple %514, 8 : i32
    %516 = arith.index_cast %515 : i32 to index
    %c0_158 = arith.constant 0 : index
    %517 = vector.load %arg14[%516, %c0_158] : memref<64x128xf32, #tpu.memory_space<vmem>>, vector<8x128xf32>
    %cst_159 = arith.constant dense<0.000000e+00> : vector<8x128xf32>
    %518 = tpu.matmul %509, %299, %cst_159 {dimension_numbers = #tpu.dot_dimension_numbers<[1], [0], [0], [1], [0, 0, 1, 1], [], []>} : vector<8x32xf32>, vector<32x128xf32>, vector<8x128xf32> -> vector<8x128xf32>
    %519 = arith.addf %517, %518 : vector<8x128xf32>
    %520 = vector.extract_strided_slice %519 {offsets = [0, 0], sizes = [8, 32], strides = [1, 1]} : vector<8x128xf32> to vector<8x32xf32>
    %521 = arith.negf %520 : vector<8x32xf32>
    %522 = math.exp %521 : vector<8x32xf32>
    %cst_160 = arith.constant 1.000000e+00 : f32
    %523 = vector.broadcast %cst_160 : f32 to vector<8x32xf32>
    %524 = arith.addf %523, %522 : vector<8x32xf32>
    %525 = arith.divf %523, %524 : vector<8x32xf32>
    %526 = vector.extract_strided_slice %519 {offsets = [0, 32], sizes = [8, 32], strides = [1, 1]} : vector<8x128xf32> to vector<8x32xf32>
    %527 = arith.negf %526 : vector<8x32xf32>
    %528 = math.exp %527 : vector<8x32xf32>
    %cst_161 = arith.constant 1.000000e+00 : f32
    %529 = vector.broadcast %cst_161 : f32 to vector<8x32xf32>
    %530 = arith.addf %529, %528 : vector<8x32xf32>
    %531 = arith.divf %529, %530 : vector<8x32xf32>
    %532 = vector.extract_strided_slice %519 {offsets = [0, 64], sizes = [8, 32], strides = [1, 1]} : vector<8x128xf32> to vector<8x32xf32>
    %533 = math.tanh %532 : vector<8x32xf32>
    %534 = vector.extract_strided_slice %519 {offsets = [0, 96], sizes = [8, 32], strides = [1, 1]} : vector<8x128xf32> to vector<8x32xf32>
    %535 = arith.negf %534 : vector<8x32xf32>
    %536 = math.exp %535 : vector<8x32xf32>
    %cst_162 = arith.constant 1.000000e+00 : f32
    %537 = vector.broadcast %cst_162 : f32 to vector<8x32xf32>
    %538 = arith.addf %537, %536 : vector<8x32xf32>
    %539 = arith.divf %537, %538 : vector<8x32xf32>
    %540 = arith.mulf %531, %507 : vector<8x32xf32>
    %541 = arith.mulf %525, %533 : vector<8x32xf32>
    %542 = arith.addf %540, %541 : vector<8x32xf32>
    %543 = math.tanh %542 : vector<8x32xf32>
    %544 = arith.mulf %539, %543 : vector<8x32xf32>
    %545 = arith.index_cast %c6_i32_156 : i32 to index
    %c0_163 = arith.constant 0 : index
    %c0_164 = arith.constant 0 : index
    %546 = vector.load %arg8[%545, %c0_163, %c0_164] : memref<8x8x32xf32, #tpu.memory_space<vmem>>, vector<1x8x32xf32>
    %547 = vector.shape_cast %546 : vector<1x8x32xf32> to vector<8x32xf32>
    %548 = vector.shape_cast %544 : vector<8x32xf32> to vector<1x8x32xf32>
    tpu.vector_store %arg8[%545, %c0_163, %c0_164], %548 {strides = array<i32>} : memref<8x8x32xf32, #tpu.memory_space<vmem>>, vector<1x8x32xf32>,
    %c7_i32_165 = arith.constant 7 : i32
    %c8_i32_166 = arith.constant 8 : i32
    %549 = arith.muli %c7_i32_165, %c8_i32_166 : i32
    %550 = tpu.assume_multiple %549, 8 : i32
    %551 = arith.index_cast %550 : i32 to index
    %c0_167 = arith.constant 0 : index
    %552 = vector.load %arg14[%551, %c0_167] : memref<64x128xf32, #tpu.memory_space<vmem>>, vector<8x128xf32>
    %cst_168 = arith.constant dense<0.000000e+00> : vector<8x128xf32>
    %553 = tpu.matmul %544, %299, %cst_168 {dimension_numbers = #tpu.dot_dimension_numbers<[1], [0], [0], [1], [0, 0, 1, 1], [], []>} : vector<8x32xf32>, vector<32x128xf32>, vector<8x128xf32> -> vector<8x128xf32>
    %554 = arith.addf %552, %553 : vector<8x128xf32>
    %555 = vector.extract_strided_slice %554 {offsets = [0, 0], sizes = [8, 32], strides = [1, 1]} : vector<8x128xf32> to vector<8x32xf32>
    %556 = arith.negf %555 : vector<8x32xf32>
    %557 = math.exp %556 : vector<8x32xf32>
    %cst_169 = arith.constant 1.000000e+00 : f32
    %558 = vector.broadcast %cst_169 : f32 to vector<8x32xf32>
    %559 = arith.addf %558, %557 : vector<8x32xf32>
    %560 = arith.divf %558, %559 : vector<8x32xf32>
    %561 = vector.extract_strided_slice %554 {offsets = [0, 32], sizes = [8, 32], strides = [1, 1]} : vector<8x128xf32> to vector<8x32xf32>
    %562 = arith.negf %561 : vector<8x32xf32>
    %563 = math.exp %562 : vector<8x32xf32>
    %cst_170 = arith.constant 1.000000e+00 : f32
    %564 = vector.broadcast %cst_170 : f32 to vector<8x32xf32>
    %565 = arith.addf %564, %563 : vector<8x32xf32>
    %566 = arith.divf %564, %565 : vector<8x32xf32>
    %567 = vector.extract_strided_slice %554 {offsets = [0, 64], sizes = [8, 32], strides = [1, 1]} : vector<8x128xf32> to vector<8x32xf32>
    %568 = math.tanh %567 : vector<8x32xf32>
    %569 = vector.extract_strided_slice %554 {offsets = [0, 96], sizes = [8, 32], strides = [1, 1]} : vector<8x128xf32> to vector<8x32xf32>
    %570 = arith.negf %569 : vector<8x32xf32>
    %571 = math.exp %570 : vector<8x32xf32>
    %cst_171 = arith.constant 1.000000e+00 : f32
    %572 = vector.broadcast %cst_171 : f32 to vector<8x32xf32>
    %573 = arith.addf %572, %571 : vector<8x32xf32>
    %574 = arith.divf %572, %573 : vector<8x32xf32>
    %575 = arith.mulf %566, %542 : vector<8x32xf32>
    %576 = arith.mulf %560, %568 : vector<8x32xf32>
    %577 = arith.addf %575, %576 : vector<8x32xf32>
    %578 = math.tanh %577 : vector<8x32xf32>
    %579 = arith.mulf %574, %578 : vector<8x32xf32>
    %580 = arith.index_cast %c7_i32_165 : i32 to index
    %c0_172 = arith.constant 0 : index
    %c0_173 = arith.constant 0 : index
    %581 = vector.load %arg8[%580, %c0_172, %c0_173] : memref<8x8x32xf32, #tpu.memory_space<vmem>>, vector<1x8x32xf32>
    %582 = vector.shape_cast %581 : vector<1x8x32xf32> to vector<8x32xf32>
    %583 = vector.shape_cast %579 : vector<8x32xf32> to vector<1x8x32xf32>
    tpu.vector_store %arg8[%580, %c0_172, %c0_173], %583 {strides = array<i32>} : memref<8x8x32xf32, #tpu.memory_space<vmem>>, vector<1x8x32xf32>,
    %c8_i32_174 = arith.constant 8 : i32
    %c1_175 = arith.constant 1 : index
    %c0_176 = arith.constant 0 : index
    %c0_177 = arith.constant 0 : index
    %584 = vector.load %arg11[%c1_175, %c0_176, %c0_177] : memref<2x8x32xf32, #tpu.memory_space<vmem>>, vector<1x8x32xf32>
    %585 = vector.shape_cast %584 : vector<1x8x32xf32> to vector<8x32xf32>
    %586 = vector.shape_cast %579 : vector<8x32xf32> to vector<1x8x32xf32>
    tpu.vector_store %arg11[%c1_175, %c0_176, %c0_177], %586 {strides = array<i32>} : memref<2x8x32xf32, #tpu.memory_space<vmem>>, vector<1x8x32xf32>,
    %c1_178 = arith.constant 1 : index
    %c0_179 = arith.constant 0 : index
    %c0_180 = arith.constant 0 : index
    %587 = vector.load %arg12[%c1_178, %c0_179, %c0_180] : memref<2x8x32xf32, #tpu.memory_space<vmem>>, vector<1x8x32xf32>
    %588 = vector.shape_cast %587 : vector<1x8x32xf32> to vector<8x32xf32>
    %589 = vector.shape_cast %577 : vector<8x32xf32> to vector<1x8x32xf32>
    tpu.vector_store %arg12[%c1_178, %c0_179, %c0_180], %589 {strides = array<i32>} : memref<2x8x32xf32, #tpu.memory_space<vmem>>, vector<1x8x32xf32>,
    %c0_i32_181 = arith.constant 0 : i32
    %590 = arith.cmpi eq, %arg1, %c0_i32_181 : i32
    %591 = arith.extui %590 : i1 to i32
    %c0_i32_182 = arith.constant 0 : i32
    %592 = arith.cmpi ne, %591, %c0_i32_182 : i32
    scf.if %592 {
      %c0_183 = arith.constant 0 : index
      %c0_184 = arith.constant 0 : index
      %c0_185 = arith.constant 0 : index
      %593 = vector.load %arg11[%c0_183, %c0_184, %c0_185] : memref<2x8x32xf32, #tpu.memory_space<vmem>>, vector<2x8x32xf32>
      %c0_186 = arith.constant 0 : index
      %c0_187 = arith.constant 0 : index
      %c0_188 = arith.constant 0 : index
      %594 = vector.load %arg9[%c0_186, %c0_187, %c0_188] : memref<2x8x32xf32, #tpu.memory_space<vmem>>, vector<2x8x32xf32>
      tpu.vector_store %arg9[%c0_186, %c0_187, %c0_188], %593 {strides = array<i32>} : memref<2x8x32xf32, #tpu.memory_space<vmem>>, vector<2x8x32xf32>,
      %c0_189 = arith.constant 0 : index
      %c0_190 = arith.constant 0 : index
      %c0_191 = arith.constant 0 : index
      %595 = vector.load %arg12[%c0_189, %c0_190, %c0_191] : memref<2x8x32xf32, #tpu.memory_space<vmem>>, vector<2x8x32xf32>
      %c0_192 = arith.constant 0 : index
      %c0_193 = arith.constant 0 : index
      %c0_194 = arith.constant 0 : index
      %596 = vector.load %arg10[%c0_192, %c0_193, %c0_194] : memref<2x8x32xf32, #tpu.memory_space<vmem>>, vector<2x8x32xf32>
      tpu.vector_store %arg10[%c0_192, %c0_193, %c0_194], %595 {strides = array<i32>} : memref<2x8x32xf32, #tpu.memory_space<vmem>>, vector<2x8x32xf32>,
    } else {
    }
    return
  }
  func.func @transform_0(%arg0: i32, %arg1: i32) -> (i32, i32, i32) {
    %c0_i32 = arith.constant 0 : i32
    %c0_i32_0 = arith.constant 0 : i32
    return %arg1, %arg0, %c0_i32 : i32, i32, i32
  }
  func.func @transform_1(%arg0: i32, %arg1: i32) -> (i32, i32, i32) {
    %c0_i32 = arith.constant 0 : i32
    %c0_i32_0 = arith.constant 0 : i32
    %c0_i32_1 = arith.constant 0 : i32
    %c0_i32_2 = arith.constant 0 : i32
    return %c0_i32, %c0_i32_0, %c0_i32_1 : i32, i32, i32
  }
  func.func @transform_2(%arg0: i32, %arg1: i32) -> (i32, i32, i32) {
    %c0_i32 = arith.constant 0 : i32
    %c0_i32_0 = arith.constant 0 : i32
    %c0_i32_1 = arith.constant 0 : i32
    %c0_i32_2 = arith.constant 0 : i32
    return %c0_i32, %c0_i32_0, %c0_i32_1 : i32, i32, i32
  }
  func.func @transform_3(%arg0: i32, %arg1: i32) -> (i32, i32, i32) {
    %c0_i32 = arith.constant 0 : i32
    %c0_i32_0 = arith.constant 0 : i32
    %c0_i32_1 = arith.constant 0 : i32
    %c0_i32_2 = arith.constant 0 : i32
    return %c0_i32, %c0_i32_0, %c0_i32_1 : i32, i32, i32
  }
  func.func @transform_4(%arg0: i32, %arg1: i32) -> (i32, i32, i32) {
    %c0_i32 = arith.constant 0 : i32
    %c0_i32_0 = arith.constant 0 : i32
    %c0_i32_1 = arith.constant 0 : i32
    return %c0_i32, %arg0, %c0_i32_0 : i32, i32, i32
  }
  func.func @transform_5(%arg0: i32, %arg1: i32) -> (i32, i32, i32) {
    %c0_i32 = arith.constant 0 : i32
    %c0_i32_0 = arith.constant 0 : i32
    %c0_i32_1 = arith.constant 0 : i32
    return %c0_i32, %arg0, %c0_i32_0 : i32, i32, i32
  }
  func.func @transform_6(%arg0: i32, %arg1: i32) -> (i32, i32, i32) {
    %c0_i32 = arith.constant 0 : i32
    %c0_i32_0 = arith.constant 0 : i32
    return %arg1, %arg0, %c0_i32 : i32, i32, i32
  }
  func.func @transform_7(%arg0: i32, %arg1: i32) -> (i32, i32, i32) {
    %c0_i32 = arith.constant 0 : i32
    %c0_i32_0 = arith.constant 0 : i32
    %c0_i32_1 = arith.constant 0 : i32
    return %c0_i32, %arg0, %c0_i32_0 : i32, i32, i32
  }
  func.func @transform_8(%arg0: i32, %arg1: i32) -> (i32, i32, i32) {
    %c0_i32 = arith.constant 0 : i32
    %c0_i32_0 = arith.constant 0 : i32
    %c0_i32_1 = arith.constant 0 : i32
    return %c0_i32, %arg0, %c0_i32_0 : i32, i32, i32
  }
}

</mosaic_0001>

<bundles_post_ra>
// kernel: lstm_decoder_forward.3
= control target key start
LH: loop header
LB: loop body
LE: loop exit
PB: predicated region body
PF: predicated region fallthrough
CT: control target
= control target key end

     0   :  { %vm39_vm0 = vcmask 261120   ;;  %s792_s1 = inlined_call_operand.vmem [shape: f32[32,32], index: 1, kind: input, shape index: {}]   ;;  %s793_s0 = inlined_call_operand.vmem [shape: f32[64,32], index: 0, kind: input, shape index: {}]   ;;  %s794_s4 = inlined_call_operand.vmem [shape: f32[32,128], index: 4, kind: input, shape index: {}]   ;;  %s795_s2 = inlined_call_operand.vmem [shape: f32[1,32], index: 2, kind: input, shape index: {}]   ;;  %s796_s3 = inlined_call_operand.vmem [shape: f32[1,32], index: 3, kind: input, shape index: {}]   ;;  %s797_s5 = inlined_call_operand.vmem [shape: f32[1,128], index: 5, kind: input, shape index: {}]   ;;  %s798_s6 = inlined_call_operand.vmem [shape: f32[64,128], index: 6, kind: output, shape index: {}]  }
   0x1   :  { %v35_v0 = vld [vmem:[%s792_s1] sm:$0xff]  ;;  %v36_v1 = vld [vmem:[%s792_s1 + $0x8] sm:$0xff]  ;;  %v37_v2 = vld [vmem:[%s792_s1 + $0x10] sm:$0xff] }
   0x2   :  { %v564_v3 = vpack.c.bf16 %v36_v1, %v35_v0  ;;  %v38_v4 = vld [vmem:[%s792_s1 + $0x18] sm:$0xff]  ;;  %v27_v5 = vld [vmem:[%s793_s0] sm:$0xff]  ;;  %v28_v7 = vld [vmem:[%s793_s0 + $0x8] sm:$0xff] }
   0x3   :  { %v568_v6 = vpack.c.bf16 %v38_v4, %v37_v2  ;;  %532 = vmatprep.mubr.msk.f32.mxu0 %vm39_vm0, %v27_v5  ;;  %v29_v8 = vld [vmem:[%s793_s0 + $0x10] sm:$0xff]  ;;  %v30_v9 = vld [vmem:[%s793_s0 + $0x18] sm:$0xff]  ;;  %v31_v10 = vld [vmem:[%s793_s0 + $0x20] sm:$0xff] }
   0x4   :  { %565 = vmatprep.subr.bf16.mxu0 %v564_v3  ;;  %v32_v11 = vld [vmem:[%s793_s0 + $0x28] sm:$0xff]  ;;  %v33_v12 = vld [vmem:[%s793_s0 + $0x30] sm:$0xff]  ;;  %v34_v13 = vld [vmem:[%s793_s0 + $0x38] sm:$0xff] }
   0x5   :  { %567 = vmatpush3.bf16.msra.mxu0 %v564_v3 }
   0x6   :  { %569 = vmatprep.subr.bf16.mxu0 %v568_v6 }
   0x9   :  { %571 = vmatpush3.bf16.msra.mxu0 %v568_v6  ;;  %v328_v6 = vld [vmem:[%s794_s4] sm:$0xff] }
   0xc   :  { %533 = vmatmul.mubr.msk.f32.vlgmr.msra.gmra.mrb[0].mxu0 %vm39_vm0, %v28_v7  ;;  %v329_v7 = vld [vmem:[%s794_s4 + $0x8] sm:$0xff] }
   0xd   :  { %535 = vmatprep.mubr.msk.f32.mxu0 %vm39_vm0, %v29_v8  ;;  %v572_v8 = vpack.c.bf16 %v329_v7, %v328_v6 }
   0xf   :  { %573 = vmatprep.subr.bf16.mxu1 %v572_v8 }
  0x10   :  { %536 = vmatmul.mubr.msk.f32.gmra.mrb[2].mxu0 %vm39_vm0, %v30_v9  ;;  %575 = vmatpush3.bf16.msra.mxu1 %v572_v8  ;;  %v330_v9 = vld [vmem:[%s794_s4 + $0x10] sm:$0xff] }
  0x11   :  { %538 = vmatprep.mubr.msk.f32.mxu0 %vm39_vm0, %v31_v10  ;;  %v331_v10 = vld [vmem:[%s794_s4 + $0x18] sm:$0xff] }
  0x14   :  { %539 = vmatmul.mubr.msk.f32.gmra.mrb[4].mxu0 %vm39_vm0, %v32_v11  ;;  %v576_v11 = vpack.c.bf16 %v331_v10, %v330_v9 }
  0x15   :  { %541 = vmatprep.mubr.msk.f32.mxu0 %vm39_vm0, %v33_v12 }
  0x16   :  { %577 = vmatprep.subr.bf16.mxu1 %v576_v11 }
  0x17   :  { %579 = vmatpush3.bf16.msra.mxu1 %v576_v11 }
  0x18   :  { %542 = vmatmul.mubr.msk.f32.gmra.mrb[6].mxu0 %vm39_vm0, %v34_v13 }
  0xdf   :  { %v534_v14 = vpop.f32.mrb[0].mxu0 }
  0xe0   :  { %v130_v15 = vpop.f32.mrb[1].mxu0  ;;  %v172_v19 = vsel %vm39_vm0, %v534_v14, 0.0 }
  0xe1   :  { %v169_v16 = vsel %vm39_vm0, %v130_v15, 0.0 }
  0xe2   :  { %170 = vadd.xlane.f32.xlu0 %v169_v16 }
  0xe3   :  { %v537_v17 = vpop.f32.mrb[2].mxu0 }
  0xe4   :  { %v140_v18 = vpop.f32.mrb[3].mxu0  ;;  %v178_v23 = vsel %vm39_vm0, %v537_v17, 0.0 }
  0xe5   :  { %v175_v20 = vsel %vm39_vm0, %v140_v18, 0.0 }
  0xe6   :  { %173 = vadd.xlane.f32.xlu0 %v172_v19  ;;  %176 = vadd.xlane.f32.xlu1 %v175_v20 }
  0xe7   :  { %v540_v21 = vpop.f32.mrb[4].mxu0 }
  0xe8   :  { %v150_v22 = vpop.f32.mrb[5].mxu0  ;;  %v184_v27 = vsel %vm39_vm0, %v540_v21, 0.0 }
  0xe9   :  { %v181_v24 = vsel %vm39_vm0, %v150_v22, 0.0 }
  0xea   :  { %179 = vadd.xlane.f32.xlu1 %v178_v23  ;;  %182 = vadd.xlane.f32.xlu0 %v181_v24 }
  0xeb   :  { %v543_v25 = vpop.f32.mrb[6].mxu0 }
  0xec   :  { %v160_v26 = vpop.f32.mrb[7].mxu0  ;;  %v190_v29 = vsel %vm39_vm0, %v543_v25, 0.0 }
  0xed   :  { %v187_v28 = vsel %vm39_vm0, %v160_v26, 0.0 }
  0xee   :  { %185 = vadd.xlane.f32.xlu1 %v184_v27  ;;  %188 = vadd.xlane.f32.xlu0 %v187_v28 }
  0xf2   :  { %191 = vadd.xlane.f32.xlu1 %v190_v29 }
 0x16f   :  { %v171_v30 = vpop.xlane.xlu0 %170 }
 0x170   :  { %v194_v31 = vmul.f32 0.03125, %v171_v30 }
 0x172   :  { %v683_v32 = vsub.f32 %v130_v15, %v194_v31 }
 0x173   :  { %v174_v33 = vpop.xlane.xlu0 %173  ;;  %v177_v34 = vpop.xlane.xlu1 %176 }
 0x174   :  { %v195_v35 = vmul.f32 0.03125, %v174_v33  ;;  %v196_v36 = vmul.f32 0.03125, %v177_v34  ;;  %v210_v37 = vmul.f32 %v683_v32, %v683_v32  ;;  %v489_v33 = vld [vmem:[%s795_s2] ss:$0 sm:$0xff] }
 0x176   :  { %v687_v38 = vsub.f32 %v534_v14, %v195_v35  ;;  %v689_v39 = vsub.f32 %v140_v18, %v196_v36  ;;  %v218_v40 = vsel %vm39_vm0, %v210_v37, 0.0 }
 0x177   :  { %v180_v41 = vpop.xlane.xlu1 %179  ;;  %v183_v42 = vpop.xlane.xlu0 %182  ;;  %219 = vadd.xlane.f32.xlu0 %v218_v40  ;;  %v490_v40 = vld [vmem:[%s796_s3] ss:$0 sm:$0xff] }
 0x178   :  { %v197_v43 = vmul.f32 0.03125, %v180_v41  ;;  %v198_v44 = vmul.f32 0.03125, %v183_v42  ;;  %v211_v45 = vmul.f32 %v687_v38, %v687_v38  ;;  %v212_v46 = vmul.f32 %v689_v39, %v689_v39 }
 0x17a   :  { %v696_v47 = vsub.f32 %v537_v17, %v197_v43  ;;  %v698_v48 = vsub.f32 %v150_v22, %v198_v44  ;;  %v221_v49 = vsel %vm39_vm0, %v211_v45, 0.0  ;;  %v224_v50 = vsel %vm39_vm0, %v212_v46, 0.0 }
 0x17b   :  { %v186_v51 = vpop.xlane.xlu1 %185  ;;  %222 = vadd.xlane.f32.xlu1 %v221_v49  ;;  %225 = vadd.xlane.f32.xlu0 %v224_v50  ;;  %v189_v52 = vpop.xlane.xlu0 %188 }
 0x17c   :  { %v199_v53 = vmul.f32 0.03125, %v186_v51  ;;  %v200_v54 = vmul.f32 0.03125, %v189_v52  ;;  %v213_v55 = vmul.f32 %v696_v47, %v696_v47  ;;  %v214_v56 = vmul.f32 %v698_v48, %v698_v48 }
 0x17e   :  { %v706_v57 = vsub.f32 %v540_v21, %v199_v53  ;;  %v708_v58 = vsub.f32 %v160_v26, %v200_v54  ;;  %v227_v59 = vsel %vm39_vm0, %v213_v55, 0.0  ;;  %v230_v60 = vsel %vm39_vm0, %v214_v56, 0.0 }
 0x17f   :  { %228 = vadd.xlane.f32.xlu1 %v227_v59  ;;  %v192_v61 = vpop.xlane.xlu1 %191  ;;  %231 = vadd.xlane.f32.xlu0 %v230_v60 }
 0x180   :  { %v201_v62 = vmul.f32 0.03125, %v192_v61  ;;  %v215_v63 = vmul.f32 %v706_v57, %v706_v57  ;;  %v216_v0 = vmul.f32 %v708_v58, %v708_v58 }
 0x182   :  { %v716_v1 = vsub.f32 %v543_v25, %v201_v62  ;;  %v233_v2 = vsel %vm39_vm0, %v215_v63, 0.0  ;;  %v236_v3 = vsel %vm39_vm0, %v216_v0, 0.0 }
 0x183   :  { %234 = vadd.xlane.f32.xlu1 %v233_v2  ;;  %237 = vadd.xlane.f32.xlu0 %v236_v3 }
 0x184   :  { %v217_v4 = vmul.f32 %v716_v1, %v716_v1 }
 0x186   :  { %v239_v5 = vsel %vm39_vm0, %v217_v4, 0.0 }
 0x187   :  { %240 = vadd.xlane.f32.xlu1 %v239_v5 }
 0x204   :  { %v220_v12 = vpop.xlane.xlu0 %219 }
 0x205   :  { %v242_v13 = vmul.f32 0.03125, %v220_v12 }
 0x207   :  { %v250_v14 = vadd.f32 1e-05, %v242_v13 }
 0x208   :  { %v223_v15 = vpop.xlane.xlu1 %222  ;;  %v226_v16 = vpop.xlane.xlu0 %225 }
 0x209   :  { %580 = vrsqrt.f32 %v250_v14  ;;  %v243_v17 = vmul.f32 0.03125, %v223_v15  ;;  %v244_v18 = vmul.f32 0.03125, %v226_v16 }
 0x20b   :  { %v251_v19 = vadd.f32 1e-05, %v243_v17  ;;  %v252_v20 = vadd.f32 1e-05, %v244_v18 }
 0x20c   :  { %v229_v21 = vpop.xlane.xlu1 %228  ;;  %v232_v22 = vpop.xlane.xlu0 %231 }
 0x20d   :  { %582 = vrsqrt.f32 %v251_v19  ;;  %v245_v23 = vmul.f32 0.03125, %v229_v21  ;;  %v246_v24 = vmul.f32 0.03125, %v232_v22  ;;  %v491_v22 = vld [vmem:[%s797_s5] ss:$0 sm:$0xff] }
 0x20e   :  { %584 = vrsqrt.f32 %v252_v20 }
 0x20f   :  { %v253_v25 = vadd.f32 1e-05, %v245_v23  ;;  %v254_v26 = vadd.f32 1e-05, %v246_v24 }
 0x210   :  { %v235_v27 = vpop.xlane.xlu1 %234  ;;  %v238_v28 = vpop.xlane.xlu0 %237 }
 0x211   :  { %586 = vrsqrt.f32 %v253_v25  ;;  %v247_v29 = vmul.f32 0.03125, %v235_v27  ;;  %v248_v30 = vmul.f32 0.03125, %v238_v28 }
 0x212   :  { %588 = vrsqrt.f32 %v254_v26 }
 0x213   :  { %v581_v31 = vpop.eup %580  ;;  %v255_v34 = vadd.f32 1e-05, %v247_v29  ;;  %v256_v35 = vadd.f32 1e-05, %v248_v30 }
 0x214   :  { %v266_v36 = vmul.f32 %v581_v31, %v683_v32  ;;  %v241_v37 = vpop.xlane.xlu1 %240 }
 0x215   :  { %590 = vrsqrt.f32 %v255_v34  ;;  %v249_v41 = vmul.f32 0.03125, %v241_v37 }
 0x216   :  { %v281_v42 = vmul.f32 %v489_v33, %v266_v36  ;;  %592 = vrsqrt.f32 %v256_v35 }
 0x217   :  { %v583_v43 = vpop.eup %582  ;;  %v257_v44 = vadd.f32 1e-05, %v249_v41 }
 0x218   :  { %v585_v45 = vpop.eup %584  ;;  %v296_v46 = vadd.f32 %v490_v40, %v281_v42  ;;  %v267_v49 = vmul.f32 %v583_v43, %v687_v38 }
 0x219   :  { %v268_v50 = vmul.f32 %v585_v45, %v689_v39  ;;  %594 = vrsqrt.f32 %v257_v44 }
 0x21a   :  { %v304_v51 = vmax.f32 %v296_v46, 0.0  ;;  %v282_v32 = vmul.f32 %v489_v33, %v267_v49 }
 0x21b   :  { %v587_v52 = vpop.eup %586  ;;  %v283_v53 = vmul.f32 %v489_v33, %v268_v50 }
 0x21c   :  { %v589_v54 = vpop.eup %588  ;;  %312 = vst.msk [vmem:[#allocation2] sm:$0xff] %vm39_vm0, %v304_v51  ;;  %v297_v55 = vadd.f32 %v490_v40, %v282_v32  ;;  %v269_v56 = vmul.f32 %v587_v52, %v696_v47 }
 0x21d   :  { %v298_v59 = vadd.f32 %v490_v40, %v283_v53  ;;  %v270_v60 = vmul.f32 %v589_v54, %v698_v48 }
 0x21e   :  { %v305_v61 = vmax.f32 %v297_v55, 0.0  ;;  %v284_v62 = vmul.f32 %v489_v33, %v269_v56 }
 0x21f   :  { %v591_v63 = vpop.eup %590  ;;  %v306_v38 = vmax.f32 %v298_v59, 0.0  ;;  %v285_v0 = vmul.f32 %v489_v33, %v270_v60 }
 0x220   :  { %v593_v39 = vpop.eup %592  ;;  %313 = vst.msk [vmem:[#allocation2 + $0x8] sm:$0xff] %vm39_vm0, %v305_v61  ;;  %v299_v2 = vadd.f32 %v490_v40, %v284_v62  ;;  %v271_v3 = vmul.f32 %v591_v63, %v706_v57 }
 0x221   :  { %314 = vst.msk [vmem:[#allocation2 + $0x10] sm:$0xff] %vm39_vm0, %v306_v38  ;;  %v300_v4 = vadd.f32 %v490_v40, %v285_v0  ;;  %v272_v5 = vmul.f32 %v593_v39, %v708_v58 }
 0x222   :  { %v307_v47 = vmax.f32 %v299_v2, 0.0  ;;  %v286_v6 = vmul.f32 %v489_v33, %v271_v3 }
 0x223   :  { %v595_v7 = vpop.eup %594  ;;  %v308_v48 = vmax.f32 %v300_v4, 0.0  ;;  %v287_v8 = vmul.f32 %v489_v33, %v272_v5  ;;  %v320_v9 = vld [vmem:[#allocation2] sm:$0xff] }
 0x224   :  { %315 = vst.msk [vmem:[#allocation2 + $0x18] sm:$0xff] %vm39_vm0, %v307_v47  ;;  %v301_v10 = vadd.f32 %v490_v40, %v286_v6  ;;  %v273_v11 = vmul.f32 %v595_v7, %v716_v1  ;;  %552 = vmatprep.mubr.msk.f32.mxu1 %vm39_vm0, %v320_v9 }
 0x225   :  { %316 = vst.msk [vmem:[#allocation2 + $0x20] sm:$0xff] %vm39_vm0, %v308_v48  ;;  %v302_v57 = vadd.f32 %v490_v40, %v287_v8 }
 0x226   :  { %v309_v12 = vmax.f32 %v301_v10, 0.0  ;;  %v288_v13 = vmul.f32 %v489_v33, %v273_v11 }
 0x227   :  { %v310_v14 = vmax.f32 %v302_v57, 0.0  ;;  %v321_v58 = vld [vmem:[#allocation2 + $0x8] sm:$0xff] }
 0x228   :  { %317 = vst.msk [vmem:[#allocation2 + $0x28] sm:$0xff] %vm39_vm0, %v309_v12  ;;  %v303_v15 = vadd.f32 %v490_v40, %v288_v13  ;;  %553 = vmatmul.mubr.msk.f32.vlgmr.msra.gmra.mrb[0].mxu1 %vm39_vm0, %v321_v58  ;;  %v322_v16 = vld [vmem:[#allocation2 + $0x10] sm:$0xff] }
 0x229   :  { %318 = vst.msk [vmem:[#allocation2 + $0x30] sm:$0xff] %vm39_vm0, %v310_v14  ;;  %555 = vmatprep.mubr.msk.f32.mxu1 %vm39_vm0, %v322_v16 }
 0x22a   :  { %v311_v1 = vmax.f32 %v303_v15, 0.0 }
 0x22b   :  { %v323_v17 = vld [vmem:[#allocation2 + $0x18] sm:$0xff] }
 0x22c   :  { %319 = vst.msk [vmem:[#allocation2 + $0x38] sm:$0xff] %vm39_vm0, %v311_v1  ;;  %556 = vmatmul.mubr.msk.f32.gmra.mrb[2].mxu1 %vm39_vm0, %v323_v17  ;;  %v324_v18 = vld [vmem:[#allocation2 + $0x20] sm:$0xff] }
 0x22d   :  { %558 = vmatprep.mubr.msk.f32.mxu1 %vm39_vm0, %v324_v18 }
 0x22f   :  { %v325_v19 = vld [vmem:[#allocation2 + $0x28] sm:$0xff] }
 0x230   :  { %559 = vmatmul.mubr.msk.f32.gmra.mrb[4].mxu1 %vm39_vm0, %v325_v19  ;;  %v326_v20 = vld [vmem:[#allocation2 + $0x30] sm:$0xff] }
 0x231   :  { %561 = vmatprep.mubr.msk.f32.mxu1 %vm39_vm0, %v326_v20 }
 0x233   :  { %v327_v21 = vld [vmem:[#allocation2 + $0x38] sm:$0xff] }
 0x234   :  { %562 = vmatmul.mubr.msk.f32.gmra.mrb[6].mxu1 %vm39_vm0, %v327_v21 }
 0x2fb   :  { %v554_v23 = vpop.f32.mrb[0].mxu1 }
 0x2fc   :  { %v436_v24 = vadd.f32 %v554_v23, %v491_v22  ;;  %v430_v25 = vpop.f32.mrb[1].mxu1 }
 0x2fd   :  { %v431_v26 = vadd.f32 %v491_v22, %v430_v25 }
 0x2fe   :  { %470 = vst [vmem:[%s798_s6 + $0x8] sm:$0xff] %v436_v24 }
 0x2ff   :  { %469 = vst [vmem:[%s798_s6] sm:$0xff] %v431_v26  ;;  %v557_v27 = vpop.f32.mrb[2].mxu1 }
 0x300   :  { %v446_v28 = vadd.f32 %v557_v27, %v491_v22  ;;  %v440_v29 = vpop.f32.mrb[3].mxu1 }
 0x301   :  { %v441_v30 = vadd.f32 %v491_v22, %v440_v29 }
 0x302   :  { %472 = vst [vmem:[%s798_s6 + $0x18] sm:$0xff] %v446_v28 }
 0x303   :  { %471 = vst [vmem:[%s798_s6 + $0x10] sm:$0xff] %v441_v30  ;;  %v560_v31 = vpop.f32.mrb[4].mxu1 }
 0x304   :  { %v456_v33 = vadd.f32 %v560_v31, %v491_v22  ;;  %v450_v34 = vpop.f32.mrb[5].mxu1 }
 0x305   :  { %v451_v35 = vadd.f32 %v491_v22, %v450_v34 }
 0x306   :  { %474 = vst [vmem:[%s798_s6 + $0x28] sm:$0xff] %v456_v33 }
 0x307   :  { %473 = vst [vmem:[%s798_s6 + $0x20] sm:$0xff] %v451_v35  ;;  %v563_v36 = vpop.f32.mrb[6].mxu1 }
 0x308   :  { %v466_v37 = vadd.f32 %v563_v36, %v491_v22  ;;  %v460_v40 = vpop.f32.mrb[7].mxu1 }
 0x309   :  { %v461_v41 = vadd.f32 %v491_v22, %v460_v40 }
 0x30a   :  { %476 = vst [vmem:[%s798_s6 + $0x38] sm:$0xff] %v466_v37 }
 0x30b   :  { %475 = vst [vmem:[%s798_s6 + $0x30] sm:$0xff] %v461_v41 }

// kernel: lstm_decoder_forward.2
= control target key start
LH: loop header
LB: loop body
LE: loop exit
PB: predicated region body
PF: predicated region fallthrough
CT: control target
= control target key end

     0   :  { %v2715_v2 = vmov 0.0|0.0   ;;  %vm2716_vm0 = vmmov 0   ;;  %v2717_v4 = vmov 0.0   ;;  %vm32_vm1 = vcmask 261120   ;;  %s2718_s10 = smov 64   ;;  %s2719_s11 = smov 32   ;;  %s3183_s1 = inlined_call_operand.vmem [shape: f32[2,32,128], index: 1, kind: input, shape index: {}]   ;;  %s3184_s2 = inlined_call_operand.vmem [shape: f32[2,32,128], index: 2, kind: input, shape index: {}]   ;;  %s3185_s0 = inlined_call_operand.vmem [shape: f32[8,8,32], index: 0, kind: input, shape index: {}]   ;;  %s3186_s4 = inlined_call_operand.vmem [shape: f32[2,8,32], index: 4, kind: input, shape index: {}, may-alias: {4,5}]   ;;  %s3187_s5 = inlined_call_operand.vmem [shape: f32[2,8,32], index: 5, kind: input, shape index: {}, may-alias: {4,5}]   ;;  %s3188_s3 = inlined_call_operand.vmem [shape: f32[2,1,128], index: 3, kind: input, shape index: {}]   ;;  %s3189_s6 = inlined_call_operand.vmem [shape: f32[8,8,32], index: 6, kind: output, shape index: {0}]   ;;  %s3190_s7 = inlined_call_operand.vmem [shape: f32[2,8,32], index: 7, kind: output, shape index: {1}]   ;;  %s3191_s8 = inlined_call_operand.vmem [shape: f32[2,8,32], index: 8, kind: output, shape index: {2}]  }
   0x1   :  { %v47_v0 = vld [vmem:[%s3183_s1] sm:$0xff]  ;;  %v48_v1 = vld [vmem:[%s3183_s1 + $0x8] sm:$0xff]  ;;  %2477 = vmatprep.subr.bf16.mxu1 %v2715_v2  ;;  %2281 = vmatprep.mubr.msk.f32.mxu1 %vm2716_vm0, %v2717_v4  ;;  %v49_v7 = vld [vmem:[%s3183_s1 + $0x10] sm:$0xff]  ;;  %s2720_s9 = smov 96  }
   0x2   :  { %v196_v3 = vld [vmem:[%s3184_s2] sm:$0xff]  ;;  %v2469_v5 = vpack.c.bf16 %v48_v1, %v47_v0  ;;  %v197_v6 = vld [vmem:[%s3184_s2 + $0x8] sm:$0xff]  ;;  %v50_v8 = vld [vmem:[%s3183_s1 + $0x18] sm:$0xff] }
   0x3   :  { %v2787_v9 = vpack.c.bf16 %v197_v6, %v196_v3  ;;  %v2473_v10 = vpack.c.bf16 %v50_v8, %v49_v7  ;;  %v39_v11 = vld [vmem:[%s3185_s0] sm:$0xff]  ;;  %v198_v12 = vld [vmem:[%s3184_s2 + $0x10] sm:$0xff]  ;;  %v199_v13 = vld [vmem:[%s3184_s2 + $0x18] sm:$0xff] }
   0x4   :  { %2470 = vmatprep.subr.bf16.mxu0 %v2469_v5  ;;  %2261 = vmatprep.mubr.msk.f32.mxu0 %vm32_vm1, %v39_v11  ;;  %v30_v14 = vld [vmem:[%s3186_s4] sm:$0xff]  ;;  %v31_v15 = vld [vmem:[%s3186_s4 + $0x8] sm:$0xff]  ;;  %v2806_v16 = vpack.c.bf16 %v199_v13, %v198_v12  ;;  %v41_v57 = vld [vmem:[%s3185_s0 + $0x10] sm:$0xff] }
   0x5   :  { %2472 = vmatpush3.bf16.msra.mxu0 %v2469_v5  ;;  %2479 = vmatpush3.bf16.msra.mxu1 %v2787_v9  ;;  %33 = vst.msk [vmem:[#allocation2] sm:$0xff] %vm32_vm1, %v30_v14  ;;  %34 = vst.msk [vmem:[#allocation2 + $0x8] sm:$0xff] %vm32_vm1, %v31_v15  ;;  %v40_v17 = vld [vmem:[%s3185_s0 + $0x8] sm:$0xff]  ;;  %v35_v19 = vld [vmem:[%s3187_s5] sm:$0xff] }
   0x6   :  { %2474 = vmatprep.subr.bf16.mxu0 %v2473_v10  ;;  %2480 = vmatprep.subr.bf16.mxu1 %v2715_v2  ;;  %37 = vst.msk [vmem:[#allocation3] sm:$0xff] %vm32_vm1, %v35_v19  ;;  %v2836_v20 = vld [vmem:[%s3188_s3] ss:$0 sm:$0xff]  ;;  %v42_v58 = vld [vmem:[%s3185_s0 + $0x18] sm:$0xff]  ;;  %v44_v60 = vld [vmem:[%s3185_s0 + $0x28] sm:$0xff] }
   0x7   :  { %v43_v59 = vld [vmem:[%s3185_s0 + $0x20] sm:$0xff]  ;;  %v45_v61 = vld [vmem:[%s3185_s0 + $0x30] sm:$0xff]  ;;  %v46_v62 = vld [vmem:[%s3185_s0 + $0x38] sm:$0xff] }
   0x9   :  { %2476 = vmatpush3.bf16.msra.mxu0 %v2473_v10  ;;  %2482 = vmatpush3.bf16.msra.mxu1 %v2806_v16 }
   0xa   :  { %2483 = vmatprep.subr.bf16.mxu1 %v2715_v2  ;;  %2489 = vmatprep.subr.bf16.mxu0 %v2715_v2 }
   0xc   :  { %2262 = vmatmul.mubr.msk.f32.vlgmr.msra.gmra.mrb[0].mxu0 %vm32_vm1, %v40_v17  ;;  %v200_v18 = vld [vmem:[#allocation2] sm:$0xff] }
   0xd   :  { %2282 = vmatmul.mubr.msk.f32.vlgmr.msra.gmra.mrb[0].mxu1 %vm32_vm1, %v200_v18  ;;  %2491 = vmatpush3.bf16.msra.mxu0 %v2787_v9  ;;  %v201_v28 = vld [vmem:[#allocation3] sm:$0xff] }
   0xe   :  { %2485 = vmatpush3.bf16.msra.mxu1 %v2787_v9  ;;  %2292 = vmatprep.mubr.msk.f32.mxu1 %vm2716_vm0, %v2717_v4 }
   0xf   :  { %2486 = vmatprep.subr.bf16.mxu1 %v2715_v2  ;;  %2492 = vmatprep.subr.bf16.mxu0 %v2715_v2 }
  0x10   :  { %2264 = vmatprep.mubr.msk.f32.mxu0 %vm32_vm1, %v41_v57 }
  0x11   :  { %2494 = vmatpush3.bf16.msra.mxu0 %v2806_v16 }
  0x12   :  { %2488 = vmatpush3.bf16.msra.mxu1 %v2806_v16  ;;  %2501 = vmatprep.subr.bf16.mxu0 %v2715_v2 }
  0x13   :  { %2495 = vmatprep.subr.bf16.mxu1 %v2715_v2  ;;  %2265 = vmatmul.mubr.msk.f32.gmra.mrb[2].mxu0 %vm32_vm1, %v42_v58 }
  0x14   :  { %2267 = vmatprep.mubr.msk.f32.mxu0 %vm32_vm1, %v43_v59 }
  0x17   :  { %2268 = vmatmul.mubr.msk.f32.gmra.mrb[4].mxu0 %vm32_vm1, %v44_v60 }
  0x18   :  { %2270 = vmatprep.mubr.msk.f32.mxu0 %vm32_vm1, %v45_v61 }
  0x1b   :  { %2271 = vmatmul.mubr.msk.f32.gmra.mrb[6].mxu0 %vm32_vm1, %v46_v62 }
  0x1c   :  { %2303 = vmatprep.mubr.msk.f32.mxu0 %vm2716_vm0, %v2717_v4 }
  0xdf   :  { %v2263_v21 = vpop.f32.mrb[0].mxu0 }
  0xe0   :  { %v149_v22 = vpop.f32.mrb[1].mxu0  ;;  %v272_v23 = vpop.f32.mrb[0].mxu1  ;;  %v155_v43 = vadd.f32 %v2263_v21, %v2836_v20 }
  0xe1   :  { %v150_v24 = vadd.f32 %v2836_v20, %v149_v22  ;;  %v2283_v25 = vpop.f32.mrb[1].mxu1 }
  0xe3   :  { %v276_v26 = vadd.f32 %v272_v23, %v150_v24 }
  0xe5   :  { %2587 = vtanh.f32 %v276_v26  ;;  %v2093_v29 = vmul.f32 -1.442695, %v276_v26 }
  0xe6   :  { %v2266_v3 = vpop.f32.mrb[2].mxu0 }
  0xe7   :  { %2589 = vpow2.f32 %v2093_v29  ;;  %v159_v5 = vpop.f32.mrb[3].mxu0 }
  0xe8   :  { %v160_v12 = vadd.f32 %v2836_v20, %v159_v5 }
  0xea   :  { %v2883_v6 = vpop.f32.mrb[4].mxu0 }
  0xeb   :  { %v2885_v7 = vpop.f32.mrb[5].mxu0 }
  0xee   :  { %v2887_v8 = vpop.f32.mrb[6].mxu0 }
  0xef   :  { %v2588_v27 = vpop.eup %2587  ;;  %v2889_v10 = vpop.f32.mrb[7].mxu0 }
  0xf0   :  { %290 = vrot.lane.b32.xlu0 %v2588_v27, %s2718_s10 }
  0xf1   :  { %v2590_v30 = vpop.eup %2589 }
  0xf2   :  { %v280_v31 = vadd.f32 1.0, %v2590_v30 }
  0xf4   :  { %285 = vrot.lane.b32.xlu0 %v201_v28, %s2719_s11  ;;  %2591 = vrcp.f32 %v280_v31 }
  0xfe   :  { %v2592_v32 = vpop.eup %2591 }
 0x162   :  { %v291_v33 = vpop.permute.xlu0 %290 }
 0x163   :  { %v293_v34 = vmul.f32 %v2592_v32, %v291_v33 }
 0x165   :  { %295 = vrot.lane.b32.xlu1 %v293_v34, %s2719_s11 }
 0x166   :  { %v286_v35 = vpop.permute.xlu0 %285 }
 0x167   :  { %v288_v36 = vmul.f32 %v2592_v32, %v286_v35 }
 0x1d7   :  { %v296_v37 = vpop.permute.xlu1 %295 }
 0x1d8   :  { %v298_v38 = vadd.f32 %v296_v37, %v288_v36 }
 0x1da   :  { %2593 = vtanh.f32 %v298_v38 }
 0x1e4   :  { %v2594_v39 = vpop.eup %2593 }
 0x1e5   :  { %301 = vrot.lane.b32.xlu1 %v2594_v39, %s2718_s10 }
 0x257   :  { %v302_v40 = vpop.permute.xlu1 %301 }
 0x258   :  { %v304_v41 = vmul.f32 %v2592_v32, %v302_v40  ;;  %v165_v32 = vadd.f32 %v2266_v3, %v2836_v20 }
 0x25a   :  { %306 = vrot.lane.b32.xlu0 %v304_v41, %s2719_s11 }
 0x2cc   :  { %v307_v42 = vpop.permute.xlu0 %306 }
 0x2cd   :  { %309 = vst.msk [vmem:[#allocation4] sm:$0xff] %vm32_vm1, %v307_v42  ;;  %2293 = vmatmul.mubr.msk.f32.vlgmr.msra.gmra.mrb[2].mxu1 %vm32_vm1, %v307_v42 }
 0x2ce   :  { %2497 = vmatpush3.bf16.msra.mxu1 %v2787_v9  ;;  %2314 = vmatprep.mubr.msk.f32.mxu1 %vm2716_vm0, %v2717_v4 }
 0x2cf   :  { %2498 = vmatprep.subr.bf16.mxu1 %v2715_v2 }
 0x2d2   :  { %2500 = vmatpush3.bf16.msra.mxu1 %v2806_v16 }
 0x2d3   :  { %2507 = vmatprep.subr.bf16.mxu1 %v2715_v2 }
 0x3a0   :  { %v380_v44 = vpop.f32.mrb[2].mxu1 }
 0x3a1   :  { %v384_v45 = vadd.f32 %v380_v44, %v155_v43  ;;  %v2294_v46 = vpop.f32.mrb[3].mxu1 }
 0x3a3   :  { %2595 = vtanh.f32 %v384_v45  ;;  %v2095_v48 = vmul.f32 -1.442695, %v384_v45 }
 0x3a5   :  { %2597 = vpow2.f32 %v2095_v48 }
 0x3ad   :  { %v2596_v47 = vpop.eup %2595 }
 0x3ae   :  { %394 = vrot.lane.b32.xlu1 %v2596_v47, %s2718_s10 }
 0x3af   :  { %v2598_v49 = vpop.eup %2597 }
 0x3b0   :  { %v388_v50 = vadd.f32 1.0, %v2598_v49 }
 0x3b2   :  { %2599 = vrcp.f32 %v388_v50  ;;  %v170_v50 = vadd.f32 %v2836_v20, %v2885_v7  ;;  %v175_v7 = vadd.f32 %v2883_v6, %v2836_v20 }
 0x3bc   :  { %v2600_v51 = vpop.eup %2599 }
 0x3bd   :  { %v392_v54 = vmul.f32 %v2600_v51, %v298_v38 }
 0x420   :  { %v395_v52 = vpop.permute.xlu1 %394 }
 0x421   :  { %v397_v53 = vmul.f32 %v2600_v51, %v395_v52 }
 0x423   :  { %399 = vrot.lane.b32.xlu0 %v397_v53, %s2719_s11 }
 0x495   :  { %v400_v55 = vpop.permute.xlu0 %399 }
 0x496   :  { %v402_v56 = vadd.f32 %v400_v55, %v392_v54 }
 0x498   :  { %2601 = vtanh.f32 %v402_v56 }
 0x4a2   :  { %v2602_v63 = vpop.eup %2601 }
 0x4a3   :  { %405 = vrot.lane.b32.xlu1 %v2602_v63, %s2718_s10 }
 0x515   :  { %v406_v0 = vpop.permute.xlu1 %405 }
 0x516   :  { %v408_v1 = vmul.f32 %v2600_v51, %v406_v0 }
 0x518   :  { %410 = vrot.lane.b32.xlu0 %v408_v1, %s2719_s11 }
 0x58a   :  { %v411_v11 = vpop.permute.xlu0 %410 }
 0x58b   :  { %414 = vst.msk [vmem:[#allocation4 + $0x8] sm:$0xff] %vm32_vm1, %v411_v11  ;;  %2304 = vmatmul.mubr.msk.f32.vlgmr.msra.gmra.mrb[8].mxu0 %vm32_vm1, %v411_v11 }
 0x58c   :  { %2503 = vmatpush3.bf16.msra.mxu0 %v2787_v9  ;;  %2325 = vmatprep.mubr.msk.f32.mxu0 %vm2716_vm0, %v2717_v4 }
 0x58d   :  { %2504 = vmatprep.subr.bf16.mxu0 %v2715_v2 }
 0x590   :  { %2506 = vmatpush3.bf16.msra.mxu0 %v2806_v16 }
 0x591   :  { %2513 = vmatprep.subr.bf16.mxu0 %v2715_v2 }
 0x65e   :  { %v485_v13 = vpop.f32.mrb[8].mxu0 }
 0x65f   :  { %v489_v14 = vadd.f32 %v485_v13, %v160_v12  ;;  %v2305_v15 = vpop.f32.mrb[9].mxu0 }
 0x661   :  { %2603 = vtanh.f32 %v489_v14  ;;  %v2097_v18 = vmul.f32 -1.442695, %v489_v14 }
 0x663   :  { %2605 = vpow2.f32 %v2097_v18 }
 0x66b   :  { %v2604_v17 = vpop.eup %2603 }
 0x66c   :  { %499 = vrot.lane.b32.xlu1 %v2604_v17, %s2718_s10 }
 0x66d   :  { %v2606_v19 = vpop.eup %2605 }
 0x66e   :  { %v493_v21 = vadd.f32 1.0, %v2606_v19 }
 0x670   :  { %2607 = vrcp.f32 %v493_v21 }
 0x67a   :  { %v2608_v22 = vpop.eup %2607 }
 0x67b   :  { %v497_v25 = vmul.f32 %v2608_v22, %v402_v56 }
 0x6de   :  { %v500_v23 = vpop.permute.xlu1 %499 }
 0x6df   :  { %v502_v24 = vmul.f32 %v2608_v22, %v500_v23  ;;  %v2108_v23 = vld [vmem:[%s3183_s1 + $0x20] sm:$0xff] }
 0x6e1   :  { %504 = vrot.lane.b32.xlu0 %v502_v24, %s2719_s11  ;;  %v2109_v24 = vld [vmem:[%s3183_s1 + $0x28] sm:$0xff] }
 0x753   :  { %v505_v26 = vpop.permute.xlu0 %504 }
 0x754   :  { %v507_v27 = vadd.f32 %v505_v26, %v497_v25  ;;  %v2525_v25 = vpack.c.bf16 %v2109_v24, %v2108_v23 }
 0x756   :  { %2609 = vtanh.f32 %v507_v27 }
 0x760   :  { %v2610_v28 = vpop.eup %2609 }
 0x761   :  { %510 = vrot.lane.b32.xlu1 %v2610_v28, %s2718_s10 }
 0x7d3   :  { %v511_v29 = vpop.permute.xlu1 %510 }
 0x7d4   :  { %v513_v30 = vmul.f32 %v2608_v22, %v511_v29  ;;  %v2110_v29 = vld [vmem:[%s3183_s1 + $0x30] sm:$0xff] }
 0x7d6   :  { %515 = vrot.lane.b32.xlu0 %v513_v30, %s2719_s11  ;;  %v2111_v30 = vld [vmem:[%s3183_s1 + $0x38] sm:$0xff] }
 0x848   :  { %v516_v31 = vpop.permute.xlu0 %515 }
 0x849   :  { %519 = vst.msk [vmem:[#allocation4 + $0x10] sm:$0xff] %vm32_vm1, %v516_v31  ;;  %2315 = vmatmul.mubr.msk.f32.vlgmr.msra.gmra.mrb[4].mxu1 %vm32_vm1, %v516_v31  ;;  %v2529_v31 = vpack.c.bf16 %v2111_v30, %v2110_v29 }
 0x84a   :  { %2509 = vmatpush3.bf16.msra.mxu1 %v2787_v9  ;;  %2336 = vmatprep.mubr.msk.f32.mxu1 %vm2716_vm0, %v2717_v4 }
 0x84b   :  { %2510 = vmatprep.subr.bf16.mxu1 %v2715_v2 }
 0x84e   :  { %2512 = vmatpush3.bf16.msra.mxu1 %v2806_v16 }
 0x84f   :  { %2519 = vmatprep.subr.bf16.mxu1 %v2715_v2 }
 0x91c   :  { %v590_v33 = vpop.f32.mrb[4].mxu1 }
 0x91d   :  { %v594_v34 = vadd.f32 %v590_v33, %v165_v32  ;;  %v2316_v35 = vpop.f32.mrb[5].mxu1  ;;  %v1051_v33 = vld [vmem:[#allocation4] sm:$0xff] }
 0x91e   :  { %v1053_v35 = vld [vmem:[#allocation4 + $0x10] sm:$0xff] }
 0x91f   :  { %2611 = vtanh.f32 %v594_v34  ;;  %v2099_v37 = vmul.f32 -1.442695, %v594_v34  ;;  %v1052_v34 = vld [vmem:[#allocation4 + $0x8] sm:$0xff] }
 0x921   :  { %2613 = vpow2.f32 %v2099_v37 }
 0x929   :  { %v2612_v36 = vpop.eup %2611 }
 0x92a   :  { %604 = vrot.lane.b32.xlu1 %v2612_v36, %s2718_s10 }
 0x92b   :  { %v2614_v38 = vpop.eup %2613 }
 0x92c   :  { %v598_v39 = vadd.f32 1.0, %v2614_v38 }
 0x92e   :  { %2615 = vrcp.f32 %v598_v39  ;;  %v180_v39 = vadd.f32 %v2836_v20, %v2889_v10 }
 0x938   :  { %v2616_v40 = vpop.eup %2615 }
 0x939   :  { %v602_v43 = vmul.f32 %v2616_v40, %v507_v27 }
 0x99c   :  { %v605_v41 = vpop.permute.xlu1 %604 }
 0x99d   :  { %v607_v42 = vmul.f32 %v2616_v40, %v605_v41 }
 0x99f   :  { %609 = vrot.lane.b32.xlu0 %v607_v42, %s2719_s11 }
 0xa11   :  { %v610_v44 = vpop.permute.xlu0 %609 }
 0xa12   :  { %v612_v45 = vadd.f32 %v610_v44, %v602_v43 }
 0xa14   :  { %2617 = vtanh.f32 %v612_v45 }
 0xa1e   :  { %v2618_v46 = vpop.eup %2617 }
 0xa1f   :  { %615 = vrot.lane.b32.xlu1 %v2618_v46, %s2718_s10 }
 0xa91   :  { %v616_v47 = vpop.permute.xlu1 %615 }
 0xa92   :  { %v618_v48 = vmul.f32 %v2616_v40, %v616_v47 }
 0xa94   :  { %620 = vrot.lane.b32.xlu0 %v618_v48, %s2719_s11 }
 0xb06   :  { %v621_v49 = vpop.permute.xlu0 %620 }
 0xb07   :  { %624 = vst.msk [vmem:[#allocation4 + $0x18] sm:$0xff] %vm32_vm1, %v621_v49  ;;  %2326 = vmatmul.mubr.msk.f32.vlgmr.msra.gmra.mrb[10].mxu0 %vm32_vm1, %v621_v49 }
 0xb08   :  { %2515 = vmatpush3.bf16.msra.mxu0 %v2787_v9  ;;  %2347 = vmatprep.mubr.msk.f32.mxu0 %vm2716_vm0, %v2717_v4 }
 0xb09   :  { %2516 = vmatprep.subr.bf16.mxu0 %v2715_v2 }
 0xb0c   :  { %2518 = vmatpush3.bf16.msra.mxu0 %v2806_v16 }
 0xb0d   :  { %2526 = vmatprep.subr.bf16.mxu0 %v2525_v25 }
 0xb0e   :  { %v1054_v36 = vld [vmem:[#allocation4 + $0x18] sm:$0xff] }
 0xbda   :  { %v695_v51 = vpop.f32.mrb[10].mxu0 }
 0xbdb   :  { %v699_v52 = vadd.f32 %v695_v51, %v170_v50  ;;  %v2327_v53 = vpop.f32.mrb[11].mxu0 }
 0xbdd   :  { %2619 = vtanh.f32 %v699_v52  ;;  %v2101_v55 = vmul.f32 -1.442695, %v699_v52 }
 0xbdf   :  { %2621 = vpow2.f32 %v2101_v55 }
 0xbe7   :  { %v2620_v54 = vpop.eup %2619 }
 0xbe8   :  { %709 = vrot.lane.b32.xlu1 %v2620_v54, %s2718_s10 }
 0xbe9   :  { %v2622_v56 = vpop.eup %2621 }
 0xbea   :  { %v703_v57 = vadd.f32 1.0, %v2622_v56 }
 0xbec   :  { %2623 = vrcp.f32 %v703_v57 }
 0xbf6   :  { %v2624_v58 = vpop.eup %2623 }
 0xbf7   :  { %v707_v61 = vmul.f32 %v2624_v58, %v612_v45 }
 0xc5a   :  { %v710_v59 = vpop.permute.xlu1 %709 }
 0xc5b   :  { %v712_v60 = vmul.f32 %v2624_v58, %v710_v59  ;;  %v2122_v59 = vld [vmem:[%s3184_s2 + $0x20] sm:$0xff] }
 0xc5d   :  { %714 = vrot.lane.b32.xlu0 %v712_v60, %s2719_s11  ;;  %v2123_v60 = vld [vmem:[%s3184_s2 + $0x28] sm:$0xff] }
 0xccf   :  { %v715_v62 = vpop.permute.xlu0 %714 }
 0xcd0   :  { %v717_v63 = vadd.f32 %v715_v62, %v707_v61  ;;  %v2989_v61 = vpack.c.bf16 %v2123_v60, %v2122_v59  ;;  %v2124_v62 = vld [vmem:[%s3184_s2 + $0x30] sm:$0xff] }
 0xcd2   :  { %2625 = vtanh.f32 %v717_v63 }
 0xcdc   :  { %v2626_v0 = vpop.eup %2625 }
 0xcdd   :  { %720 = vrot.lane.b32.xlu1 %v2626_v0, %s2718_s10 }
 0xd4f   :  { %v721_v1 = vpop.permute.xlu1 %720 }
 0xd50   :  { %v723_v3 = vmul.f32 %v2624_v58, %v721_v1  ;;  %v36_v1 = vld [vmem:[%s3187_s5 + $0x8] sm:$0xff] }
 0xd51   :  { %38 = vst.msk [vmem:[#allocation3 + $0x8] sm:$0xff] %vm32_vm1, %v36_v1 }
 0xd52   :  { %725 = vrot.lane.b32.xlu0 %v723_v3, %s2719_s11 }
 0xdc4   :  { %v726_v5 = vpop.permute.xlu0 %725 }
 0xdc5   :  { %729 = vst.msk [vmem:[#allocation4 + $0x20] sm:$0xff] %vm32_vm1, %v726_v5  ;;  %2337 = vmatmul.mubr.msk.f32.vlgmr.msra.gmra.mrb[6].mxu1 %vm32_vm1, %v726_v5 }
 0xdc6   :  { %2521 = vmatpush3.bf16.msra.mxu1 %v2787_v9  ;;  %2358 = vmatprep.mubr.msk.f32.mxu1 %vm2716_vm0, %v2717_v4 }
 0xdc7   :  { %2522 = vmatprep.subr.bf16.mxu1 %v2715_v2 }
 0xdca   :  { %2524 = vmatpush3.bf16.msra.mxu1 %v2806_v16 }
 0xdcb   :  { %2533 = vmatprep.subr.bf16.mxu1 %v2715_v2 }
 0xdcc   :  { %v1055_v37 = vld [vmem:[#allocation4 + $0x20] sm:$0xff] }
 0xe98   :  { %v800_v11 = vpop.f32.mrb[6].mxu1 }
 0xe99   :  { %v804_v12 = vadd.f32 %v800_v11, %v175_v7  ;;  %v2338_v13 = vpop.f32.mrb[7].mxu1  ;;  %v1217_v7 = vld [vmem:[#allocation3 + $0x8] sm:$0xff] }
 0xe9b   :  { %2627 = vtanh.f32 %v804_v12  ;;  %v2103_v9 = vmul.f32 -1.442695, %v804_v12  ;;  %v1215_v12 = vld [vmem:[#allocation2 + $0x8] sm:$0xff] }
 0xe9d   :  { %2629 = vpow2.f32 %v2103_v9 }
 0xea5   :  { %v2628_v14 = vpop.eup %2627 }
 0xea6   :  { %814 = vrot.lane.b32.xlu1 %v2628_v14, %s2718_s10  ;;  %v185_v14 = vadd.f32 %v2887_v8, %v2836_v20 }
 0xea7   :  { %v2630_v15 = vpop.eup %2629 }
 0xea8   :  { %v808_v17 = vadd.f32 1.0, %v2630_v15 }
 0xeaa   :  { %2631 = vrcp.f32 %v808_v17 }
 0xeb4   :  { %v2632_v18 = vpop.eup %2631 }
 0xeb5   :  { %v812_v21 = vmul.f32 %v2632_v18, %v717_v63  ;;  %v2125_v63 = vld [vmem:[%s3184_s2 + $0x38] sm:$0xff] }
 0xeb6   :  { %v2999_v0 = vpack.c.bf16 %v2125_v63, %v2124_v62 }
 0xf18   :  { %v815_v19 = vpop.permute.xlu1 %814 }
 0xf19   :  { %v817_v16 = vmul.f32 %v2632_v18, %v815_v19 }
 0xf1b   :  { %819 = vrot.lane.b32.xlu0 %v817_v16, %s2719_s11 }
 0xf8d   :  { %v820_v22 = vpop.permute.xlu0 %819 }
 0xf8e   :  { %v822_v6 = vadd.f32 %v820_v22, %v812_v21 }
 0xf90   :  { %2633 = vtanh.f32 %v822_v6 }
 0xf9a   :  { %v2634_v26 = vpop.eup %2633 }
 0xf9b   :  { %825 = vrot.lane.b32.xlu1 %v2634_v26, %s2718_s10 }
0x100d   :  { %v826_v27 = vpop.permute.xlu1 %825 }
0x100e   :  { %v828_v28 = vmul.f32 %v2632_v18, %v826_v27  ;;  %v3030_v18 = vld [vmem:[%s3188_s3 + $0x1] ss:$0 sm:$0xff] }
0x1010   :  { %830 = vrot.lane.b32.xlu0 %v828_v28, %s2719_s11 }
0x1082   :  { %v831_v32 = vpop.permute.xlu0 %830 }
0x1083   :  { %834 = vst.msk [vmem:[#allocation4 + $0x28] sm:$0xff] %vm32_vm1, %v831_v32  ;;  %2348 = vmatmul.mubr.msk.f32.vlgmr.msra.gmra.mrb[12].mxu0 %vm32_vm1, %v831_v32 }
0x1084   :  { %2528 = vmatpush3.bf16.msra.mxu0 %v2525_v25  ;;  %2369 = vmatprep.mubr.msk.f32.mxu0 %vm32_vm1, %v1051_v33 }
0x1085   :  { %2530 = vmatprep.subr.bf16.mxu0 %v2529_v31 }
0x1088   :  { %2532 = vmatpush3.bf16.msra.mxu0 %v2529_v31 }
0x1089   :  { %2545 = vmatprep.subr.bf16.mxu0 %v2715_v2 }
0x108a   :  { %v1056_v38 = vld [vmem:[#allocation4 + $0x28] sm:$0xff] }
0x108b   :  { %2370 = vmatmul.mubr.msk.f32.vlgmr.msra.gmra.mrb[14].mxu0 %vm32_vm1, %v1052_v34 }
0x108c   :  { %2372 = vmatprep.mubr.msk.f32.mxu0 %vm32_vm1, %v1053_v35  ;;  %2547 = vmatpush3.bf16.msra.mxu0 %v2989_v61 }
0x108d   :  { %2548 = vmatprep.subr.bf16.mxu0 %v2715_v2 }
0x108f   :  { %2373 = vmatmul.mubr.msk.f32.gmra.mrb[16].mxu0 %vm32_vm1, %v1054_v36 }
0x1090   :  { %2375 = vmatprep.mubr.msk.f32.mxu0 %vm32_vm1, %v1055_v37  ;;  %2550 = vmatpush3.bf16.msra.mxu0 %v2999_v0 }
0x1091   :  { %2557 = vmatprep.subr.bf16.mxu0 %v2715_v2 }
0x1093   :  { %2376 = vmatmul.mubr.msk.f32.gmra.mrb[18].mxu0 %vm32_vm1, %v1056_v38 }
0x1156   :  { %v905_v40 = vpop.f32.mrb[12].mxu0 }
0x1157   :  { %v909_v41 = vadd.f32 %v905_v40, %v180_v39  ;;  %v2349_v42 = vpop.f32.mrb[13].mxu0 }
0x1159   :  { %2635 = vtanh.f32 %v909_v41  ;;  %v2105_v50 = vmul.f32 -1.442695, %v909_v41 }
0x115b   :  { %2637 = vpow2.f32 %v2105_v50 }
0x115e   :  { %v2967_v43 = vpop.f32.mrb[14].mxu0 }
0x115f   :  { %v1162_v44 = vpop.f32.mrb[15].mxu0 }
0x1160   :  { %v1163_v19 = vadd.f32 %v3030_v18, %v1162_v44 }
0x1162   :  { %v2969_v45 = vpop.f32.mrb[16].mxu0 }
0x1163   :  { %v2636_v46 = vpop.eup %2635  ;;  %v2971_v47 = vpop.f32.mrb[17].mxu0 }
0x1164   :  { %919 = vrot.lane.b32.xlu1 %v2636_v46, %s2718_s10 }
0x1165   :  { %v2638_v10 = vpop.eup %2637 }
0x1166   :  { %v2974_v48 = vpop.f32.mrb[18].mxu0  ;;  %v913_v51 = vadd.f32 1.0, %v2638_v10 }
0x1167   :  { %v2976_v49 = vpop.f32.mrb[19].mxu0 }
0x1168   :  { %2639 = vrcp.f32 %v913_v51 }
0x1172   :  { %v2640_v52 = vpop.eup %2639 }
0x1173   :  { %v917_v55 = vmul.f32 %v2640_v52, %v822_v6 }
0x11d6   :  { %v920_v53 = vpop.permute.xlu1 %919 }
0x11d7   :  { %v922_v54 = vmul.f32 %v2640_v52, %v920_v53 }
0x11d9   :  { %924 = vrot.lane.b32.xlu0 %v922_v54, %s2719_s11 }
0x124b   :  { %v925_v56 = vpop.permute.xlu0 %924 }
0x124c   :  { %v2979_v57 = vadd.f32 %v925_v56, %v917_v55 }
0x124e   :  { %2641 = vtanh.f32 %v2979_v57 }
0x1258   :  { %v2642_v58 = vpop.eup %2641 }
0x1259   :  { %930 = vrot.lane.b32.xlu1 %v2642_v58, %s2718_s10 }
0x12cb   :  { %v931_v3 = vpop.permute.xlu1 %930 }
0x12cc   :  { %v933_v5 = vmul.f32 %v2640_v52, %v931_v3  ;;  %v1168_v52 = vadd.f32 %v2967_v43, %v3030_v18 }
0x12ce   :  { %935 = vrot.lane.b32.xlu0 %v933_v5, %s2719_s11 }
0x12d2   :  { %1301 = vrot.lane.b32.xlu0 %v1217_v7, %s2719_s11 }
0x1340   :  { %v936_v11 = vpop.permute.xlu0 %935 }
0x1341   :  { %939 = vst.msk [vmem:[#allocation4 + $0x30] sm:$0xff] %vm32_vm1, %v936_v11  ;;  %2359 = vmatmul.mubr.msk.f32.vlgmr.msra.gmra.mrb[8].mxu1 %vm32_vm1, %v936_v11 }
0x1342   :  { %2535 = vmatpush3.bf16.msra.mxu1 %v2989_v61  ;;  %2389 = vmatprep.mubr.msk.f32.mxu1 %vm2716_vm0, %v2717_v4 }
0x1343   :  { %2536 = vmatprep.subr.bf16.mxu1 %v2715_v2 }
0x1344   :  { %v1302_v27 = vpop.permute.xlu0 %1301 }
0x1346   :  { %2538 = vmatpush3.bf16.msra.mxu1 %v2999_v0 }
0x1347   :  { %2539 = vmatprep.subr.bf16.mxu1 %v2715_v2 }
0x1348   :  { %v1057_v13 = vld [vmem:[#allocation4 + $0x30] sm:$0xff] }
0x1349   :  { %2390 = vmatmul.mubr.msk.f32.vlgmr.msra.gmra.mrb[10].mxu1 %vm32_vm1, %v1215_v12  ;;  %2378 = vmatprep.mubr.msk.f32.mxu0 %vm32_vm1, %v1057_v13 }
0x134a   :  { %2541 = vmatpush3.bf16.msra.mxu1 %v2989_v61  ;;  %2400 = vmatprep.mubr.msk.f32.mxu1 %vm2716_vm0, %v2717_v4 }
0x134b   :  { %2542 = vmatprep.subr.bf16.mxu1 %v2715_v2 }
0x134e   :  { %2544 = vmatpush3.bf16.msra.mxu1 %v2999_v0 }
0x134f   :  { %2551 = vmatprep.subr.bf16.mxu1 %v2715_v2 }
0x1414   :  { %v1010_v9 = vpop.f32.mrb[8].mxu1 }
0x1415   :  { %v1014_v15 = vadd.f32 %v1010_v9, %v185_v14  ;;  %v2360_v17 = vpop.f32.mrb[9].mxu1 }
0x1417   :  { %v2107_v33 = vmul.f32 -1.442695, %v1014_v15 }
0x141c   :  { %v1288_v16 = vpop.f32.mrb[10].mxu1 }
0x141d   :  { %v1292_v21 = vadd.f32 %v1288_v16, %v1163_v19  ;;  %v2391_v22 = vpop.f32.mrb[11].mxu1  ;;  %v1173_v19 = vadd.f32 %v3030_v18, %v2971_v47 }
0x141f   :  { %2643 = vtanh.f32 %v1292_v21  ;;  %v2127_v23 = vmul.f32 -1.442695, %v1292_v21 }
0x1421   :  { %2645 = vpow2.f32 %v2127_v23 }
0x1429   :  { %v2644_v6 = vpop.eup %2643 }
0x142a   :  { %1306 = vrot.lane.b32.xlu1 %v2644_v6, %s2718_s10 }
0x142b   :  { %v2646_v20 = vpop.eup %2645 }
0x142c   :  { %v1296_v8 = vadd.f32 1.0, %v2646_v20 }
0x142e   :  { %2647 = vrcp.f32 %v1296_v8 }
0x1438   :  { %v2648_v24 = vpop.eup %2647 }
0x1439   :  { %v1304_v28 = vmul.f32 %v2648_v24, %v1302_v27 }
0x149c   :  { %v1307_v25 = vpop.permute.xlu1 %1306 }
0x149d   :  { %v1309_v26 = vmul.f32 %v2648_v24, %v1307_v25 }
0x149f   :  { %1311 = vrot.lane.b32.xlu1 %v1309_v26, %s2719_s11 }
0x1511   :  { %v1312_v29 = vpop.permute.xlu1 %1311 }
0x1512   :  { %v1314_v30 = vadd.f32 %v1312_v29, %v1304_v28 }
0x1514   :  { %2649 = vtanh.f32 %v1314_v30 }
0x1515   :  { %2651 = vtanh.f32 %v1014_v15 }
0x1516   :  { %2653 = vpow2.f32 %v2107_v33  ;;  %v1178_v33 = vadd.f32 %v2969_v45, %v3030_v18 }
0x151e   :  { %v2650_v31 = vpop.eup %2649 }
0x151f   :  { %1317 = vrot.lane.b32.xlu0 %v2650_v31, %s2718_s10  ;;  %v2652_v32 = vpop.eup %2651 }
0x1520   :  { %v2654_v34 = vpop.eup %2653 }
0x1521   :  { %v1018_v35 = vadd.f32 1.0, %v2654_v34 }
0x1523   :  { %1024 = vrot.lane.b32.xlu0 %v2652_v32, %s2718_s10  ;;  %2655 = vrcp.f32 %v1018_v35 }
0x152d   :  { %v2656_v38 = vpop.eup %2655 }
0x152e   :  { %v1022_v42 = vmul.f32 %v2656_v38, %v2979_v57 }
0x1591   :  { %v1318_v36 = vpop.permute.xlu0 %1317 }
0x1592   :  { %v1320_v37 = vmul.f32 %v2648_v24, %v1318_v36 }
0x1594   :  { %1322 = vrot.lane.b32.xlu1 %v1320_v37, %s2719_s11 }
0x1595   :  { %v1025_v39 = vpop.permute.xlu0 %1024 }
0x1596   :  { %v1027_v40 = vmul.f32 %v2656_v38, %v1025_v39 }
0x1598   :  { %1029 = vrot.lane.b32.xlu0 %v1027_v40, %s2719_s11 }
0x1606   :  { %v1323_v41 = vpop.permute.xlu1 %1322 }
0x1607   :  { %1325 = vst.msk [vmem:[%s3189_s6] sm:$0xff] %vm32_vm1, %v1323_v41  ;;  %2401 = vmatmul.mubr.msk.f32.vlgmr.msra.gmra.mrb[12].mxu1 %vm32_vm1, %v1323_v41 }
0x1608   :  { %2553 = vmatpush3.bf16.msra.mxu1 %v2989_v61  ;;  %2422 = vmatprep.mubr.msk.f32.mxu1 %vm2716_vm0, %v2717_v4 }
0x1609   :  { %2554 = vmatprep.subr.bf16.mxu1 %v2715_v2 }
0x160a   :  { %v1030_v44 = vpop.permute.xlu0 %1029 }
0x160b   :  { %v3049_v46 = vadd.f32 %v1030_v44, %v1022_v42 }
0x160c   :  { %2556 = vmatpush3.bf16.msra.mxu1 %v2999_v0 }
0x160d   :  { %2657 = vtanh.f32 %v3049_v46  ;;  %2563 = vmatprep.subr.bf16.mxu1 %v2715_v2 }
0x1617   :  { %v2658_v50 = vpop.eup %2657 }
0x1618   :  { %1035 = vrot.lane.b32.xlu0 %v2658_v50, %s2718_s10 }
0x168a   :  { %v1036_v10 = vpop.permute.xlu0 %1035 }
0x168b   :  { %v1038_v51 = vmul.f32 %v2656_v38, %v1036_v10 }
0x168d   :  { %1040 = vrot.lane.b32.xlu0 %v1038_v51, %s2719_s11 }
0x16da   :  { %v1395_v53 = vpop.f32.mrb[12].mxu1 }
0x16db   :  { %v1399_v54 = vadd.f32 %v1395_v53, %v1168_v52  ;;  %v2402_v55 = vpop.f32.mrb[13].mxu1 }
0x16dc   :  { %v1183_v55 = vadd.f32 %v3030_v18, %v2976_v49 }
0x16dd   :  { %2659 = vtanh.f32 %v1399_v54  ;;  %v2129_v43 = vmul.f32 -1.442695, %v1399_v54 }
0x16df   :  { %2661 = vpow2.f32 %v2129_v43 }
0x16e7   :  { %v2660_v56 = vpop.eup %2659 }
0x16e8   :  { %1409 = vrot.lane.b32.xlu1 %v2660_v56, %s2718_s10 }
0x16e9   :  { %v2662_v60 = vpop.eup %2661 }
0x16ea   :  { %v1403_v62 = vadd.f32 1.0, %v2662_v60 }
0x16ec   :  { %2663 = vrcp.f32 %v1403_v62 }
0x16f6   :  { %v2664_v63 = vpop.eup %2663 }
0x16f7   :  { %v1407_v5 = vmul.f32 %v2664_v63, %v1314_v30 }
0x16ff   :  { %v1041_v57 = vpop.permute.xlu0 %1040 }
0x1700   :  { %1044 = vst.msk [vmem:[#allocation4 + $0x38] sm:$0xff] %vm32_vm1, %v1041_v57  ;;  %1045 = vst.msk [vmem:[#allocation2] sm:$0xff] %vm32_vm1, %v1041_v57 }
0x1707   :  { %v2063_v58 = vld [vmem:[#allocation2] sm:$0xff]  ;;  %v1058_v59 = vld [vmem:[#allocation4 + $0x38] sm:$0xff] }
0x1708   :  { %2065 = vst.msk [vmem:[%s3190_s7] sm:$0xff] %vm32_vm1, %v2063_v58  ;;  %2379 = vmatmul.mubr.msk.f32.gmra.mrb[20].mxu0 %vm32_vm1, %v1058_v59 }
0x1709   :  { %2411 = vmatprep.mubr.msk.f32.mxu0 %vm2716_vm0, %v2717_v4 }
0x175a   :  { %v1410_v1 = vpop.permute.xlu1 %1409 }
0x175b   :  { %v1412_v3 = vmul.f32 %v2664_v63, %v1410_v1 }
0x175d   :  { %1414 = vrot.lane.b32.xlu1 %v1412_v3, %s2719_s11 }
0x17cf   :  { %v1415_v7 = vpop.permute.xlu1 %1414 }
0x17d0   :  { %v1417_v11 = vadd.f32 %v1415_v7, %v1407_v5 }
0x17d2   :  { %2665 = vtanh.f32 %v1417_v11 }
0x17db   :  { %v3069_v12 = vpop.f32.mrb[20].mxu0 }
0x17dc   :  { %v2666_v13 = vpop.eup %2665  ;;  %v3071_v14 = vpop.f32.mrb[21].mxu0 }
0x17dd   :  { %1420 = vrot.lane.b32.xlu1 %v2666_v13, %s2718_s10 }
0x184f   :  { %v1421_v9 = vpop.permute.xlu1 %1420 }
0x1850   :  { %v1423_v15 = vmul.f32 %v2664_v63, %v1421_v9 }
0x1852   :  { %1425 = vrot.lane.b32.xlu1 %v1423_v15, %s2719_s11 }
0x18c4   :  { %v1426_v17 = vpop.permute.xlu1 %1425 }
0x18c5   :  { %2130 = vst.msk [vmem:[%s3189_s6 + $0x8] sm:$0xff] %vm32_vm1, %v1426_v17  ;;  %2412 = vmatmul.mubr.msk.f32.vlgmr.msra.gmra.mrb[22].mxu0 %vm32_vm1, %v1426_v17  ;;  %v1188_v17 = vadd.f32 %v2974_v48, %v3030_v18 }
0x18c6   :  { %2559 = vmatpush3.bf16.msra.mxu0 %v2989_v61  ;;  %2433 = vmatprep.mubr.msk.f32.mxu0 %vm2716_vm0, %v2717_v4 }
0x18c7   :  { %2560 = vmatprep.subr.bf16.mxu0 %v2715_v2 }
0x18ca   :  { %2562 = vmatpush3.bf16.msra.mxu0 %v2999_v0 }
0x18cb   :  { %2569 = vmatprep.subr.bf16.mxu0 %v2715_v2 }
0x1998   :  { %v1499_v16 = vpop.f32.mrb[22].mxu0 }
0x1999   :  { %v1503_v21 = vadd.f32 %v1499_v16, %v1173_v19  ;;  %v2413_v22 = vpop.f32.mrb[23].mxu0 }
0x199b   :  { %2667 = vtanh.f32 %v1503_v21  ;;  %v2132_v23 = vmul.f32 -1.442695, %v1503_v21 }
0x199d   :  { %2669 = vpow2.f32 %v2132_v23 }
0x19a5   :  { %v2668_v6 = vpop.eup %2667 }
0x19a6   :  { %1513 = vrot.lane.b32.xlu0 %v2668_v6, %s2718_s10 }
0x19a7   :  { %v2670_v20 = vpop.eup %2669 }
0x19a8   :  { %v1507_v8 = vadd.f32 1.0, %v2670_v20 }
0x19aa   :  { %2671 = vrcp.f32 %v1507_v8 }
0x19b4   :  { %v2672_v24 = vpop.eup %2671 }
0x19b5   :  { %v1511_v27 = vmul.f32 %v2672_v24, %v1417_v11 }
0x1a18   :  { %v1514_v25 = vpop.permute.xlu0 %1513 }
0x1a19   :  { %v1516_v26 = vmul.f32 %v2672_v24, %v1514_v25 }
0x1a1b   :  { %1518 = vrot.lane.b32.xlu1 %v1516_v26, %s2719_s11 }
0x1a8d   :  { %v1519_v28 = vpop.permute.xlu1 %1518 }
0x1a8e   :  { %v1521_v47 = vadd.f32 %v1519_v28, %v1511_v27  ;;  %v1193_v28 = vadd.f32 %v3030_v18, %v3071_v14 }
0x1a90   :  { %2673 = vtanh.f32 %v1521_v47 }
0x1a9a   :  { %v2674_v29 = vpop.eup %2673 }
0x1a9b   :  { %1524 = vrot.lane.b32.xlu0 %v2674_v29, %s2718_s10 }
0x1b0d   :  { %v1525_v30 = vpop.permute.xlu0 %1524 }
0x1b0e   :  { %v1527_v31 = vmul.f32 %v2672_v24, %v1525_v30 }
0x1b10   :  { %1529 = vrot.lane.b32.xlu1 %v1527_v31, %s2719_s11 }
0x1b82   :  { %v1530_v32 = vpop.permute.xlu1 %1529 }
0x1b83   :  { %2133 = vst.msk [vmem:[%s3189_s6 + $0x10] sm:$0xff] %vm32_vm1, %v1530_v32  ;;  %2423 = vmatmul.mubr.msk.f32.vlgmr.msra.gmra.mrb[14].mxu1 %vm32_vm1, %v1530_v32 }
0x1b84   :  { %2565 = vmatpush3.bf16.msra.mxu1 %v2989_v61  ;;  %2444 = vmatprep.mubr.msk.f32.mxu1 %vm2716_vm0, %v2717_v4 }
0x1b85   :  { %2566 = vmatprep.subr.bf16.mxu1 %v2715_v2 }
0x1b88   :  { %2568 = vmatpush3.bf16.msra.mxu1 %v2999_v0 }
0x1b89   :  { %2575 = vmatprep.subr.bf16.mxu1 %v2715_v2 }
0x1c56   :  { %v1603_v34 = vpop.f32.mrb[14].mxu1 }
0x1c57   :  { %v1607_v35 = vadd.f32 %v1603_v34, %v1178_v33  ;;  %v2424_v36 = vpop.f32.mrb[15].mxu1 }
0x1c59   :  { %2675 = vtanh.f32 %v1607_v35  ;;  %v2135_v38 = vmul.f32 -1.442695, %v1607_v35 }
0x1c5b   :  { %2677 = vpow2.f32 %v2135_v38 }
0x1c63   :  { %v2676_v37 = vpop.eup %2675 }
0x1c64   :  { %1617 = vrot.lane.b32.xlu0 %v2676_v37, %s2718_s10 }
0x1c65   :  { %v2678_v39 = vpop.eup %2677 }
0x1c66   :  { %v1611_v40 = vadd.f32 1.0, %v2678_v39 }
0x1c68   :  { %2679 = vrcp.f32 %v1611_v40 }
0x1c72   :  { %v2680_v41 = vpop.eup %2679 }
0x1c73   :  { %v1615_v50 = vmul.f32 %v2680_v41, %v1521_v47 }
0x1cd6   :  { %v1618_v42 = vpop.permute.xlu0 %1617 }
0x1cd7   :  { %v1620_v44 = vmul.f32 %v2680_v41, %v1618_v42 }
0x1cd9   :  { %1622 = vrot.lane.b32.xlu1 %v1620_v44, %s2719_s11 }
0x1d4b   :  { %v1623_v10 = vpop.permute.xlu1 %1622 }
0x1d4c   :  { %v1625_v45 = vadd.f32 %v1623_v10, %v1615_v50  ;;  %v1198_v50 = vadd.f32 %v3069_v12, %v3030_v18 }
0x1d4e   :  { %2681 = vtanh.f32 %v1625_v45 }
0x1d58   :  { %v2682_v51 = vpop.eup %2681 }
0x1d59   :  { %1628 = vrot.lane.b32.xlu0 %v2682_v51, %s2718_s10 }
0x1dcb   :  { %v1629_v52 = vpop.permute.xlu0 %1628 }
0x1dcc   :  { %v1631_v53 = vmul.f32 %v2680_v41, %v1629_v52 }
0x1dce   :  { %1633 = vrot.lane.b32.xlu1 %v1631_v53, %s2719_s11 }
0x1e40   :  { %v1634_v54 = vpop.permute.xlu1 %1633 }
0x1e41   :  { %2136 = vst.msk [vmem:[%s3189_s6 + $0x18] sm:$0xff] %vm32_vm1, %v1634_v54  ;;  %2434 = vmatmul.mubr.msk.f32.vlgmr.msra.gmra.mrb[24].mxu0 %vm32_vm1, %v1634_v54 }
0x1e42   :  { %2571 = vmatpush3.bf16.msra.mxu0 %v2989_v61  ;;  %2455 = vmatprep.mubr.msk.f32.mxu0 %vm2716_vm0, %v2717_v4 }
0x1e43   :  { %2572 = vmatprep.subr.bf16.mxu0 %v2715_v2 }
0x1e46   :  { %2574 = vmatpush3.bf16.msra.mxu0 %v2999_v0 }
0x1f14   :  { %v1707_v56 = vpop.f32.mrb[24].mxu0 }
0x1f15   :  { %v1711_v57 = vadd.f32 %v1707_v56, %v1183_v55  ;;  %v2435_v58 = vpop.f32.mrb[25].mxu0 }
0x1f17   :  { %2683 = vtanh.f32 %v1711_v57  ;;  %v2138_v43 = vmul.f32 -1.442695, %v1711_v57 }
0x1f19   :  { %2685 = vpow2.f32 %v2138_v43 }
0x1f21   :  { %v2684_v59 = vpop.eup %2683 }
0x1f22   :  { %1721 = vrot.lane.b32.xlu0 %v2684_v59, %s2718_s10 }
0x1f23   :  { %v2686_v60 = vpop.eup %2685 }
0x1f24   :  { %v1715_v62 = vadd.f32 1.0, %v2686_v60 }
0x1f26   :  { %2687 = vrcp.f32 %v1715_v62 }
0x1f30   :  { %v2688_v63 = vpop.eup %2687 }
0x1f31   :  { %v1719_v5 = vmul.f32 %v2688_v63, %v1625_v45 }
0x1f94   :  { %v1722_v1 = vpop.permute.xlu0 %1721 }
0x1f95   :  { %v1724_v3 = vmul.f32 %v2688_v63, %v1722_v1 }
0x1f97   :  { %1726 = vrot.lane.b32.xlu1 %v1724_v3, %s2719_s11 }
0x2009   :  { %v1727_v7 = vpop.permute.xlu1 %1726 }
0x200a   :  { %v1729_v49 = vadd.f32 %v1727_v7, %v1719_v5 }
0x200c   :  { %2689 = vtanh.f32 %v1729_v49 }
0x2016   :  { %v2690_v11 = vpop.eup %2689 }
0x2017   :  { %1732 = vrot.lane.b32.xlu0 %v2690_v11, %s2718_s10 }
0x2089   :  { %v1733_v13 = vpop.permute.xlu0 %1732 }
0x208a   :  { %v1735_v9 = vmul.f32 %v2688_v63, %v1733_v13 }
0x208c   :  { %1737 = vrot.lane.b32.xlu1 %v1735_v9, %s2719_s11 }
0x20fe   :  { %v1738_v15 = vpop.permute.xlu1 %1737 }
0x20ff   :  { %2139 = vst.msk [vmem:[%s3189_s6 + $0x20] sm:$0xff] %vm32_vm1, %v1738_v15  ;;  %2445 = vmatmul.mubr.msk.f32.vlgmr.msra.gmra.mrb[16].mxu1 %vm32_vm1, %v1738_v15 }
0x2100   :  { %2577 = vmatpush3.bf16.msra.mxu1 %v2989_v61  ;;  %2466 = vmatprep.mubr.msk.f32.mxu1 %vm2716_vm0, %v2717_v4 }
0x2101   :  { %2578 = vmatprep.subr.bf16.mxu1 %v2715_v2 }
0x2104   :  { %2580 = vmatpush3.bf16.msra.mxu1 %v2999_v0 }
0x21d2   :  { %v1811_v19 = vpop.f32.mrb[16].mxu1 }
0x21d3   :  { %v1815_v16 = vadd.f32 %v1811_v19, %v1188_v17  ;;  %v2446_v21 = vpop.f32.mrb[17].mxu1 }
0x21d5   :  { %2691 = vtanh.f32 %v1815_v16  ;;  %v2141_v6 = vmul.f32 -1.442695, %v1815_v16 }
0x21d7   :  { %2693 = vpow2.f32 %v2141_v6 }
0x21df   :  { %v2692_v22 = vpop.eup %2691 }
0x21e0   :  { %1825 = vrot.lane.b32.xlu0 %v2692_v22, %s2718_s10 }
0x21e1   :  { %v2694_v61 = vpop.eup %2693 }
0x21e2   :  { %v1819_v23 = vadd.f32 1.0, %v2694_v61 }
0x21e4   :  { %2695 = vrcp.f32 %v1819_v23 }
0x21ee   :  { %v2696_v4 = vpop.eup %2695 }
0x21ef   :  { %v1823_v0 = vmul.f32 %v2696_v4, %v1729_v49 }
0x2252   :  { %v1826_v20 = vpop.permute.xlu0 %1825 }
0x2253   :  { %v1828_v2 = vmul.f32 %v2696_v4, %v1826_v20 }
0x2255   :  { %1830 = vrot.lane.b32.xlu1 %v1828_v2, %s2719_s11 }
0x22c7   :  { %v1831_v8 = vpop.permute.xlu1 %1830 }
0x22c8   :  { %v1833_v48 = vadd.f32 %v1831_v8, %v1823_v0 }
0x22ca   :  { %2697 = vtanh.f32 %v1833_v48 }
0x22d4   :  { %v2698_v24 = vpop.eup %2697 }
0x22d5   :  { %1836 = vrot.lane.b32.xlu0 %v2698_v24, %s2718_s10 }
0x2347   :  { %v1837_v25 = vpop.permute.xlu0 %1836 }
0x2348   :  { %v1839_v26 = vmul.f32 %v2696_v4, %v1837_v25 }
0x234a   :  { %1841 = vrot.lane.b32.xlu1 %v1839_v26, %s2719_s11 }
0x23bc   :  { %v1842_v27 = vpop.permute.xlu1 %1841 }
0x23bd   :  { %2142 = vst.msk [vmem:[%s3189_s6 + $0x28] sm:$0xff] %vm32_vm1, %v1842_v27  ;;  %2456 = vmatmul.mubr.msk.f32.vlgmr.msra.gmra.mrb[26].mxu0 %vm32_vm1, %v1842_v27 }
0x2490   :  { %v1915_v47 = vpop.f32.mrb[26].mxu0 }
0x2491   :  { %v1919_v29 = vadd.f32 %v1915_v47, %v1193_v28  ;;  %v2457_v30 = vpop.f32.mrb[27].mxu0 }
0x2493   :  { %2699 = vtanh.f32 %v1919_v29  ;;  %v2144_v32 = vmul.f32 -1.442695, %v1919_v29 }
0x2495   :  { %2701 = vpow2.f32 %v2144_v32 }
0x249d   :  { %v2700_v31 = vpop.eup %2699 }
0x249e   :  { %1929 = vrot.lane.b32.xlu0 %v2700_v31, %s2718_s10 }
0x249f   :  { %v2702_v33 = vpop.eup %2701 }
0x24a0   :  { %v1923_v34 = vadd.f32 1.0, %v2702_v33 }
0x24a2   :  { %2703 = vrcp.f32 %v1923_v34 }
0x24ac   :  { %v2704_v35 = vpop.eup %2703 }
0x24ad   :  { %v1927_v38 = vmul.f32 %v2704_v35, %v1833_v48 }
0x2510   :  { %v1930_v36 = vpop.permute.xlu0 %1929 }
0x2511   :  { %v1932_v37 = vmul.f32 %v2704_v35, %v1930_v36 }
0x2513   :  { %1934 = vrot.lane.b32.xlu1 %v1932_v37, %s2719_s11 }
0x2585   :  { %v1935_v39 = vpop.permute.xlu1 %1934 }
0x2586   :  { %v1937_v14 = vadd.f32 %v1935_v39, %v1927_v38 }
0x2588   :  { %2705 = vtanh.f32 %v1937_v14 }
0x2592   :  { %v2706_v40 = vpop.eup %2705 }
0x2593   :  { %1940 = vrot.lane.b32.xlu0 %v2706_v40, %s2718_s10 }
0x2605   :  { %v1941_v41 = vpop.permute.xlu0 %1940 }
0x2606   :  { %v1943_v42 = vmul.f32 %v2704_v35, %v1941_v41 }
0x2608   :  { %1945 = vrot.lane.b32.xlu1 %v1943_v42, %s2719_s11 }
0x267a   :  { %v1946_v44 = vpop.permute.xlu1 %1945 }
0x267b   :  { %2145 = vst.msk [vmem:[%s3189_s6 + $0x30] sm:$0xff] %vm32_vm1, %v1946_v44  ;;  %2467 = vmatmul.mubr.msk.f32.vlgmr.msra.gmra.mrb[18].mxu1 %vm32_vm1, %v1946_v44 }
0x274e   :  { %v2019_v10 = vpop.f32.mrb[18].mxu1 }
0x274f   :  { %v2023_v45 = vadd.f32 %v2019_v10, %v1198_v50  ;;  %v2468_v51 = vpop.f32.mrb[19].mxu1 }
0x2751   :  { %2707 = vtanh.f32 %v2023_v45  ;;  %v2147_v53 = vmul.f32 -1.442695, %v2023_v45 }
0x2753   :  { %2709 = vpow2.f32 %v2147_v53 }
0x275b   :  { %v2708_v52 = vpop.eup %2707 }
0x275c   :  { %2033 = vrot.lane.b32.xlu0 %v2708_v52, %s2718_s10 }
0x275d   :  { %v2710_v54 = vpop.eup %2709 }
0x275e   :  { %v2027_v55 = vadd.f32 1.0, %v2710_v54 }
0x2760   :  { %2711 = vrcp.f32 %v2027_v55 }
0x276a   :  { %v2712_v56 = vpop.eup %2711 }
0x276b   :  { %v2031_v18 = vmul.f32 %v2712_v56, %v1937_v14 }
0x27ce   :  { %v2034_v57 = vpop.permute.xlu0 %2033 }
0x27cf   :  { %v2036_v58 = vmul.f32 %v2712_v56, %v2034_v57 }
0x27d1   :  { %2038 = vrot.lane.b32.xlu1 %v2036_v58, %s2719_s11 }
0x27d5   :  { %1047 = vrot.lane.b32.xlu1 %v3049_v46, %s2720_s9 }
0x2843   :  { %v2039_v12 = vpop.permute.xlu1 %2038 }
0x2844   :  { %v2041_v59 = vadd.f32 %v2039_v12, %v2031_v18 }
0x2846   :  { %2713 = vtanh.f32 %v2041_v59  ;;  %2056 = vrot.lane.b32.xlu1 %v2041_v59, %s2720_s9 }
0x2847   :  { %v1048_v43 = vpop.permute.xlu1 %1047 }
0x2848   :  { %1050 = vst.msk [vmem:[#allocation3] sm:$0xff] %vm32_vm1, %v1048_v43 }
0x284f   :  { %v2067_v60 = vld [vmem:[#allocation3] sm:$0xff] }
0x2850   :  { %v2714_v62 = vpop.eup %2713  ;;  %2069 = vst.msk [vmem:[%s3191_s8] sm:$0xff] %vm32_vm1, %v2067_v60 }
0x2851   :  { %2044 = vrot.lane.b32.xlu0 %v2714_v62, %s2718_s10 }
0x28b8   :  { %v2057_v63 = vpop.permute.xlu1 %2056 }
0x28b9   :  { %2059 = vst.msk [vmem:[#allocation3 + $0x8] sm:$0xff] %vm32_vm1, %v2057_v63 }
0x28c0   :  { %v2068_v46 = vld [vmem:[#allocation3 + $0x8] sm:$0xff] }
0x28c1   :  { %2070 = vst.msk [vmem:[%s3191_s8 + $0x8] sm:$0xff] %vm32_vm1, %v2068_v46 }
0x28c3   :  { %v2045_v1 = vpop.permute.xlu0 %2044 }
0x28c4   :  { %v2047_v3 = vmul.f32 %v2712_v56, %v2045_v1 }
0x28c6   :  { %2049 = vrot.lane.b32.xlu0 %v2047_v3, %s2719_s11 }
0x2938   :  { %v2050_v5 = vpop.permute.xlu0 %2049 }
0x2939   :  { %2148 = vst.msk [vmem:[%s3189_s6 + $0x38] sm:$0xff] %vm32_vm1, %v2050_v5  ;;  %2054 = vst.msk [vmem:[#allocation2 + $0x8] sm:$0xff] %vm32_vm1, %v2050_v5 }
0x2940   :  { %v2064_v7 = vld [vmem:[#allocation2 + $0x8] sm:$0xff] }
0x2941   :  { %2066 = vst.msk [vmem:[%s3190_s7 + $0x8] sm:$0xff] %vm32_vm1, %v2064_v7 }

</bundles_post_ra>
